<compile_context>
chip_gen: v7x
topology: tpu7x:2x2x1
jax: 0.10.0
libtpu: 0.0.40
codegen_flags: <defaults>
</compile_context>

<pallas_src>
import functools
import math

import jax
import jax.numpy as jnp
import numpy as np
from jax import lax
from jax.experimental import pallas as pl
from jax.experimental.pallas import tpu as pltpu


LANE = 128   # channel dims lane-padded to multiples of this
TM = 256     # node-row tile (review: 256-512)
TK = 512     # A_hat reduction (column-block) tile (review: 512-2048)


# ------------------------------ small helpers -------------------------------

def _round_up(n, m):
    return ((n + m - 1) // m) * m


def _pad2(a, rows, cols, dtype=None):
    out = jnp.pad(a, ((0, rows - a.shape[0]), (0, cols - a.shape[1])))
    return out if dtype is None else out.astype(dtype)


@functools.lru_cache(maxsize=None)
def _vmem_limit_bytes():
    # Per-generation ceiling: ~85% of physical VMEM, capped at 100 MiB
    # (v5e/v6e: 128 MiB physical -> 100 MiB; v7x: 64 MiB -> ~54 MiB).
    try:
        cap = pltpu.get_tpu_info().vmem_capacity_bytes
        return min(int(cap * 0.85), 100 * 1024 * 1024)
    except Exception:
        return 48 * 1024 * 1024


def _probe_kernel(x_ref, o_ref):
    o_ref[...] = x_ref[...] + 1.0


@functools.lru_cache(maxsize=None)
def _buffered_supported():
    """Probe pl.Buffered(1) (single-buffered grid-invariant operands); fall
    back to default double-buffering if this JAX build rejects it."""
    try:
        spec = pl.BlockSpec((8, 128), lambda i: (0, 0),
                            pipeline_mode=pl.Buffered(1))
        fn = pl.pallas_call(
            _probe_kernel,
            out_shape=jax.ShapeDtypeStruct((8, 128), jnp.float32),
            grid=(2,),
            in_specs=[spec],
            out_specs=pl.BlockSpec((8, 128), lambda i: (0, 0)),
        )
        jax.block_until_ready(fn(jnp.zeros((8, 128), jnp.float32)))
        return True
    except Exception:
        return False


def _const_spec(shape, index_map):
    """Grid-invariant operand: VMEM-resident, single-buffered when supported."""
    if _buffered_supported():
        return pl.BlockSpec(shape, index_map, pipeline_mode=pl.Buffered(1))
    return pl.BlockSpec(shape, index_map)


def _masked_layernorm(x, gamma, beta, n_valid, eps=1e-5):
    """nn.LayerNorm over the last dim; pad lanes excluded from the statistics.
    Static fast path when there is no lane padding."""
    if n_valid == x.shape[-1]:
        mu = jnp.mean(x, axis=-1, keepdims=True)
        diff = x - mu
        var = jnp.mean(diff * diff, axis=-1, keepdims=True)
        return diff * lax.rsqrt(var + eps) * gamma + beta
    lane = lax.broadcasted_iota(jnp.int32, x.shape, dimension=x.ndim - 1)
    mask = (lane < n_valid).astype(jnp.float32)
    inv_n = 1.0 / float(n_valid)
    mu = jnp.sum(x * mask, axis=-1, keepdims=True) * inv_n
    diff = (x - mu) * mask
    var = jnp.sum(diff * diff, axis=-1, keepdims=True) * inv_n
    return diff * lax.rsqrt(var + eps) * gamma + beta * mask


def _gelu_exact(x):
    # torch.nn.functional.gelu default (exact erf). Keep erf for PyTorch parity;
    # switch to jax.nn.gelu(approximate=True) (EUP tanh) only if tolerance allows.
    return 0.5 * x * (1.0 + lax.erf(x * (1.0 / math.sqrt(2.0))))


# --------------------------------- kernels ----------------------------------

def feature_kernel(x_ref,
                   ln1g_ref, ln1b_ref,      # LayerNorm(hidden)
                   w_in_ref, b_in_ref,      # proj_in W^T [Hp,Fp] bf16, b [1,Fp] f32
                   ln2g_ref, ln2b_ref,      # SGU LayerNorm(ffn)
                   w_g_ref,                 # GCN lin W^T [Fp,Fp] bf16
                   g_out_ref,
                   *, hidden_valid, ffn_valid):
    # h = gelu(proj_in(LN1(x)))  (intermediate only; not written to HBM)
    xn = _masked_layernorm(x_ref[...], ln1g_ref[...], ln1b_ref[...], hidden_valid)
    h = jnp.dot(xn.astype(jnp.bfloat16), w_in_ref[...],
                preferred_element_type=jnp.float32) + b_in_ref[...]
    h = _gelu_exact(h)
    # SGU pre-aggregation: g = LN2(h) @ W_gcn (GCN bias added post-aggregation)
    gate = _masked_layernorm(h, ln2g_ref[...], ln2b_ref[...], ffn_valid)
    g_out_ref[...] = jnp.dot(gate.astype(jnp.bfloat16), w_g_ref[...],
                             preferred_element_type=jnp.float32
                             ).astype(g_out_ref.dtype)


def aggregate_kernel(ids_ref, cnt_ref,       # scalar-prefetched block metadata (SMEM)
                     a_ref,                  # A_hat block [TM, TK] bf16
                     g_ref,                  # g row-block [TK, Fp] bf16
                     x_ref,                  # x row tile [TM, Hp] f32
                     ln1g_ref, ln1b_ref,     # LN1 gamma/beta
                     w_in_ref, b_in_ref,     # proj_in (bf16 W, f32 b)
                     bg_ref,                 # GCN bias [1, Fp]
                     w_out_ref, bo_ref,      # proj_out (bf16 W, f32 b)
                     out_ref,                # [TM, Hp] f32
                     acc_ref, h_ref,         # f32 VMEM scratch [TM, Fp] each
                     *, hidden_valid):
    i = pl.program_id(0)
    k = pl.program_id(1)

    @pl.when(k == 0)
    def _():
        acc_ref[...] = jnp.zeros_like(acc_ref)
        # Recompute h = gelu(proj_in(LN1(x))) for row tile i (once per i);
        # avoids the h HBM round-trip between the two pallas_calls.
        xn = _masked_layernorm(x_ref[...], ln1g_ref[...], ln1b_ref[...],
                               hidden_valid)
        h = jnp.dot(xn.astype(jnp.bfloat16), w_in_ref[...],
                    preferred_element_type=jnp.float32) + b_in_ref[...]
        h_ref[...] = _gelu_exact(h)

    # Block-sparse: only accumulate real (nonzero) A_hat column blocks.
    @pl.when(k < cnt_ref[i])
    def _():
        acc_ref[...] += jnp.dot(a_ref[...], g_ref[...],
                                preferred_element_type=jnp.float32)

    @pl.when(k == pl.num_programs(1) - 1)
    def _():
        gate = jnp.tanh(acc_ref[...] + bg_ref[...])        # GCN bias, then tanh
        gated = (gate * h_ref[...]).astype(jnp.bfloat16)
        out = jnp.dot(gated, w_out_ref[...],
                      preferred_element_type=jnp.float32) + bo_ref[...]
        out_ref[...] = out.astype(out_ref.dtype)


# -------------------------------- wrappers -----------------------------------

def _feature_call(xp, p, hidden, ffn, n_pad, h_pad, f_pad):
    grid = (n_pad // TM,)
    const = lambda shape: _const_spec(shape, lambda i: (0, 0))
    kern = functools.partial(feature_kernel, hidden_valid=hidden, ffn_valid=ffn)
    return pl.pallas_call(
        kern,
        out_shape=jax.ShapeDtypeStruct((n_pad, f_pad), jnp.bfloat16),   # g
        grid=grid,
        in_specs=[
            pl.BlockSpec((TM, h_pad), lambda i: (i, 0)),   # x row tile
            const((1, h_pad)), const((1, h_pad)),          # LN1 gamma/beta
            const((h_pad, f_pad)), const((1, f_pad)),      # proj_in W (bf16), b
            const((1, f_pad)), const((1, f_pad)),          # LN2 gamma/beta
            const((f_pad, f_pad)),                         # GCN lin W (bf16)
        ],
        out_specs=pl.BlockSpec((TM, f_pad), lambda i: (i, 0)),
        compiler_params=pltpu.CompilerParams(
            dimension_semantics=("parallel",),
            vmem_limit_bytes=_vmem_limit_bytes()),
    )(xp, p["ln1_g"], p["ln1_b"], p["w_in_t"], p["b_in"],
      p["ln2_g"], p["ln2_b"], p["w_gcn_t"])


def _aggregate_call(a_pad, g, xp, p, ids, cnt, max_k, n_pad, h_pad, f_pad, hidden):
    ni = n_pad // TM
    grid = (ni, max_k)           # row tiles "parallel", nnz-block reduction last
    const = lambda shape: _const_spec(shape, lambda i, k, ids_r, cnt_r: (0, 0))
    kern = functools.partial(aggregate_kernel, hidden_valid=hidden)
    grid_spec = pltpu.PrefetchScalarGridSpec(
        num_scalar_prefetch=2,
        grid=grid,
        in_specs=[
            # A_hat block (i, ids[i,k]) and matching g row-block: the prefetched
            # compacted block-id list skips all-zero A_hat tiles (block sparse).
            pl.BlockSpec((TM, TK),
                         lambda i, k, ids_r, cnt_r: (i, ids_r[i * max_k + k])),
            pl.BlockSpec((TK, f_pad),
                         lambda i, k, ids_r, cnt_r: (ids_r[i * max_k + k], 0)),
            pl.BlockSpec((TM, h_pad), lambda i, k, ids_r, cnt_r: (i, 0)),  # x rows
            const((1, h_pad)), const((1, h_pad)),        # LN1 gamma/beta
            const((h_pad, f_pad)), const((1, f_pad)),    # proj_in W (bf16), b
            const((1, f_pad)),                           # GCN bias
            const((f_pad, h_pad)), const((1, h_pad)),    # proj_out W (bf16), b
        ],
        out_specs=pl.BlockSpec((TM, h_pad), lambda i, k, ids_r, cnt_r: (i, 0)),
        scratch_shapes=[pltpu.VMEM((TM, f_pad), jnp.float32),   # A_hat @ g accumulator
                        pltpu.VMEM((TM, f_pad), jnp.float32)],  # recomputed h
    )
    return pl.pallas_call(
        kern,
        out_shape=jax.ShapeDtypeStruct((n_pad, h_pad), jnp.float32),
        grid_spec=grid_spec,
        compiler_params=pltpu.CompilerParams(
            dimension_semantics=("parallel", "arbitrary"),
            vmem_limit_bytes=_vmem_limit_bytes()),
    )(ids, cnt, a_pad, g, xp, p["ln1_g"], p["ln1_b"], p["w_in_t"], p["b_in"],
      p["b_gcn"], p["w_out_t"], p["b_out"])


def _pad_params(p, h_pad, f_pad):
    # Weights cast to bf16 ONCE here (not per grid step inside the kernels).
    return {
        "ln1_g": _pad2(p["ln1_g"], 1, h_pad),
        "ln1_b": _pad2(p["ln1_b"], 1, h_pad),
        "w_in_t": _pad2(p["w_in_t"], h_pad, f_pad, jnp.bfloat16),
        "b_in": _pad2(p["b_in"], 1, f_pad),
        "ln2_g": _pad2(p["ln2_g"], 1, f_pad),
        "ln2_b": _pad2(p["ln2_b"], 1, f_pad),
        "w_gcn_t": _pad2(p["w_gcn_t"], f_pad, f_pad, jnp.bfloat16),
        "b_gcn": _pad2(p["b_gcn"], 1, f_pad),
        "w_out_t": _pad2(p["w_out_t"], f_pad, h_pad, jnp.bfloat16),
        "b_out": _pad2(p["b_out"], 1, h_pad),
    }


def build_block_meta(a_hat, n_pad):
    """Compacted per-row-tile list of nonzero A_hat column blocks.
    Host-side (numpy) on concrete a_hat.
    # TODO(synk): precompute ids/cnt outside jit for fully-jitted end-to-end use.
    """
    a = np.asarray(jax.device_get(a_hat))
    a = np.pad(a, ((0, n_pad - a.shape[0]), (0, n_pad - a.shape[1])))
    ni, nk = n_pad // TM, n_pad // TK
    nz = np.abs(a.reshape(ni, TM, nk, TK)).sum(axis=(1, 3)) > 0.0   # [ni, nk]
    cnt = nz.sum(axis=1).astype(np.int32)
    max_k = max(int(cnt.max()), 1)
    ids = np.zeros((ni, max_k), np.int32)
    for i in range(ni):
        nzk = np.flatnonzero(nz[i]).astype(np.int32)
        ids[i, :nzk.size] = nzk
    a_pad = jnp.asarray(a, dtype=jnp.bfloat16)       # bf16 MXU operand
    return a_pad, jnp.asarray(ids.reshape(-1)), jnp.asarray(cnt), max_k


def gmlp_layer(x, params, a_hat):
    """x: [N, hidden] f32, params: logical-size dict, a_hat: [N, N] f32
    (dense, improved-GCN-normalized adjacency)."""
    n, hidden = x.shape
    ffn = params["w_in_t"].shape[1]
    n_pad = _round_up(max(n, 1), (TM * TK) // math.gcd(TM, TK))
    h_pad = max(_round_up(hidden, LANE), LANE)
    f_pad = max(_round_up(ffn, LANE), LANE)

    xp = _pad2(x, n_pad, h_pad)
    pp = _pad_params(params, h_pad, f_pad)
    a_pad, ids, cnt, max_k = build_block_meta(a_hat, n_pad)

    g = _feature_call(xp, pp, hidden, ffn, n_pad, h_pad, f_pad)
    out = _aggregate_call(a_pad, g, xp, pp, ids, cnt, max_k,
                          n_pad, h_pad, f_pad, hidden)
    return out[:n, :hidden]


# ----------------------------- parameter setup ------------------------------

def init_params(key, hidden_dim, ffn_dim):
    ks = jax.random.split(key, 3)

    def torch_linear(k, fan_in, fan_out):
        bound = 1.0 / math.sqrt(fan_in)
        kw, kb = jax.random.split(k)
        w_t = jax.random.uniform(kw, (fan_in, fan_out), jnp.float32, -bound, bound)
        b = jax.random.uniform(kb, (1, fan_out), jnp.float32, -bound, bound)
        return w_t, b

    w_in_t, b_in = torch_linear(ks[0], hidden_dim, ffn_dim)
    w_out_t, b_out = torch_linear(ks[1], ffn_dim, hidden_dim)

    # SGU.reset_parameters(): gcn.lin.weight ~ U(-eps, eps), gcn.bias = 1.0
    init_eps = 0.001 / ffn_dim
    w_gcn_t = jax.random.uniform(ks[2], (ffn_dim, ffn_dim), jnp.float32,
                                 -init_eps, init_eps)
    b_gcn = jnp.ones((1, ffn_dim), jnp.float32)

    return {
        "ln1_g": jnp.ones((1, hidden_dim), jnp.float32),
        "ln1_b": jnp.zeros((1, hidden_dim), jnp.float32),
        "w_in_t": w_in_t, "b_in": b_in,
        "ln2_g": jnp.ones((1, ffn_dim), jnp.float32),
        "ln2_b": jnp.zeros((1, ffn_dim), jnp.float32),
        "w_gcn_t": w_gcn_t, "b_gcn": b_gcn,
        "w_out_t": w_out_t, "b_out": b_out,
    }


def build_a_hat(edge_index, num_nodes):
    # Dense "improved" GCN normalization (GCNConv(improved=True)):
    # A_hat = D^-1/2 (A + 2I) D^-1/2, aggregating into edge targets.
    src, dst = edge_index
    adj = jnp.zeros((num_nodes, num_nodes), jnp.float32)
    adj = adj.at[dst, src].add(1.0)                  # row = target node
    adj = adj + 2.0 * jnp.eye(num_nodes, dtype=jnp.float32)
    deg = adj.sum(axis=1)
    d_inv_sqrt = jnp.where(deg > 0, lax.rsqrt(deg), 0.0)
    return d_inv_sqrt[:, None] * adj * d_inv_sqrt[None, :]


# ------------------------------ pure-JAX reference ---------------------------

def gmlp_reference(x, p, a_hat):
    def ln(v, g, b):
        mu = jnp.mean(v, axis=-1, keepdims=True)
        var = jnp.mean((v - mu) ** 2, axis=-1, keepdims=True)
        return (v - mu) * lax.rsqrt(var + 1e-5) * g + b
    h = jax.nn.gelu(ln(x, p["ln1_g"], p["ln1_b"]) @ p["w_in_t"] + p["b_in"],
                    approximate=False)
    gate = jnp.tanh(a_hat @ (ln(h, p["ln2_g"], p["ln2_b"]) @ p["w_gcn_t"])
                    + p["b_gcn"])
    return (gate * h) @ p["w_out_t"] + p["b_out"]


# ---------------------------------- main ------------------------------------

if __name__ == "__main__":
    # N > TK so the aggregation has multiple A_hat column blocks and the
    # block-sparse skip path (cnt[i] < max_k) plus an all-padding row tile
    # (cnt == 0) are actually exercised; channel dims stay small.
    N, HIDDEN, FFN = 600, 32, 64

    key = jax.random.PRNGKey(0)
    kx, kp = jax.random.split(key)
    x = jax.random.normal(kx, (N, HIDDEN), jnp.float32)

    # deterministic directed graph: ring + a few chord edges
    idx = jnp.arange(N, dtype=jnp.int32)
    src = jnp.concatenate([idx, idx[: N // 4]])
    dst = jnp.concatenate([(idx + 1) % N, (idx[: N // 4] * 3 + 7) % N])
    edge_index = (src, dst)

    params = init_params(kp, HIDDEN, FFN)
    a_hat = build_a_hat(edge_index, N)

    out = gmlp_layer(x, params, a_hat)
    jax.block_until_ready(out)

    assert out.shape == (N, HIDDEN) and out.dtype == jnp.float32
    assert bool(jnp.all(jnp.isfinite(out)))
    ref = gmlp_reference(x, params, a_hat)
    assert bool(jnp.allclose(out, ref, rtol=3e-2, atol=3e-2)), (
        "max abs err %.3e" % float(jnp.max(jnp.abs(out - ref))))
    print("KERNEL_OK")
</pallas_src>

<mosaic_0001>
module attributes {stable_mosaic.version = 11 : i64} {
  func.func @_probe_kernel(%arg0: i32, %arg1: memref<8x128xf32, #tpu.memory_space<vmem>>, %arg2: memref<8x128xf32, #tpu.memory_space<vmem>>) attributes {dimension_semantics = [#tpu.dimension_semantics<arbitrary>], iteration_bounds = array<i64: 2>, scalar_prefetch = 0 : i64, scratch_operands = 0 : i64, tpu.core_type = #tpu.core_type<tc>, window_params = [{pipeline_mode = #tpu.pipeline_mode<synchronous>, transform_indices = @transform_0, window_bounds = array<i64: 8, 128>}, {pipeline_mode = #tpu.pipeline_mode<synchronous>, transform_indices = @transform_1, window_bounds = array<i64: 8, 128>}]} {
    %c0 = arith.constant 0 : index
    %c0_0 = arith.constant 0 : index
    %0 = vector.load %arg1[%c0, %c0_0] : memref<8x128xf32, #tpu.memory_space<vmem>>, vector<8x128xf32>
    %cst = arith.constant 1.000000e+00 : f32
    %1 = vector.broadcast %cst : f32 to vector<8x128xf32>
    %2 = arith.addf %0, %1 : vector<8x128xf32>
    %c0_1 = arith.constant 0 : index
    %c0_2 = arith.constant 0 : index
    %3 = vector.load %arg2[%c0_1, %c0_2] : memref<8x128xf32, #tpu.memory_space<vmem>>, vector<8x128xf32>
    tpu.vector_store %arg2[%c0_1, %c0_2], %2 {strides = array<i32>} : memref<8x128xf32, #tpu.memory_space<vmem>>, vector<8x128xf32>,
    return
  }
  func.func @transform_0(%arg0: i32) -> (i32, i32) {
    %c0_i32 = arith.constant 0 : i32
    %c0_i32_0 = arith.constant 0 : i32
    %c0_i32_1 = arith.constant 0 : i32
    return %c0_i32, %c0_i32_0 : i32, i32
  }
  func.func @transform_1(%arg0: i32) -> (i32, i32) {
    %c0_i32 = arith.constant 0 : i32
    %c0_i32_0 = arith.constant 0 : i32
    %c0_i32_1 = arith.constant 0 : i32
    return %c0_i32, %c0_i32_0 : i32, i32
  }
}

module attributes {stable_mosaic.version = 11 : i64} {
  func.func @feature_kernel(%arg0: i32, %arg1: memref<256x128xf32, #tpu.memory_space<vmem>>, %arg2: memref<1x128xf32, #tpu.memory_space<vmem>>, %arg3: memref<1x128xf32, #tpu.memory_space<vmem>>, %arg4: memref<128x128xbf16, #tpu.memory_space<vmem>>, %arg5: memref<1x128xf32, #tpu.memory_space<vmem>>, %arg6: memref<1x128xf32, #tpu.memory_space<vmem>>, %arg7: memref<1x128xf32, #tpu.memory_space<vmem>>, %arg8: memref<128x128xbf16, #tpu.memory_space<vmem>>, %arg9: memref<256x128xbf16, #tpu.memory_space<vmem>>) attributes {dimension_semantics = [#tpu.dimension_semantics<parallel>], iteration_bounds = array<i64: 4>, scalar_prefetch = 0 : i64, scratch_operands = 0 : i64, tpu.core_type = #tpu.core_type<tc>, window_params = [{transform_indices = @transform_0, window_bounds = array<i64: 256, 128>}, {pipeline_mode = #tpu.pipeline_mode<synchronous>, transform_indices = @transform_1, window_bounds = array<i64: 1, 128>}, {pipeline_mode = #tpu.pipeline_mode<synchronous>, transform_indices = @transform_2, window_bounds = array<i64: 1, 128>}, {pipeline_mode = #tpu.pipeline_mode<synchronous>, transform_indices = @transform_3, window_bounds = array<i64: 128, 128>}, {pipeline_mode = #tpu.pipeline_mode<synchronous>, transform_indices = @transform_4, window_bounds = array<i64: 1, 128>}, {pipeline_mode = #tpu.pipeline_mode<synchronous>, transform_indices = @transform_5, window_bounds = array<i64: 1, 128>}, {pipeline_mode = #tpu.pipeline_mode<synchronous>, transform_indices = @transform_6, window_bounds = array<i64: 1, 128>}, {pipeline_mode = #tpu.pipeline_mode<synchronous>, transform_indices = @transform_7, window_bounds = array<i64: 128, 128>}, {transform_indices = @transform_8, window_bounds = array<i64: 256, 128>}]} {
    %c0 = arith.constant 0 : index
    %c0_0 = arith.constant 0 : index
    %0 = vector.load %arg1[%c0, %c0_0] : memref<256x128xf32, #tpu.memory_space<vmem>>, vector<256x128xf32>
    %c0_1 = arith.constant 0 : index
    %c0_2 = arith.constant 0 : index
    %1 = vector.load %arg2[%c0_1, %c0_2] : memref<1x128xf32, #tpu.memory_space<vmem>>, vector<1x128xf32>
    %c0_3 = arith.constant 0 : index
    %c0_4 = arith.constant 0 : index
    %2 = vector.load %arg3[%c0_3, %c0_4] : memref<1x128xf32, #tpu.memory_space<vmem>>, vector<1x128xf32>
    %3 = tpu.iota {dimensions = array<i32: 1>} : vector<256x128xi32>
    %c32_i32 = arith.constant 32 : i32
    %4 = vector.broadcast %c32_i32 : i32 to vector<256x128xi32>
    %5 = arith.cmpi slt, %3, %4 : vector<256x128xi32>
    %6 = arith.extui %5 : vector<256x128xi1> to vector<256x128xi32>
    %7 = arith.sitofp %6 : vector<256x128xi32> to vector<256x128xf32>
    %8 = arith.mulf %0, %7 : vector<256x128xf32>
    %cst = arith.constant dense<0.000000e+00> : vector<256xf32>
    %9 = vector.multi_reduction <add>, %8, %cst [1] : vector<256x128xf32> to vector<256xf32>
    %10 = vector.shape_cast %9 : vector<256xf32> to vector<256x1xf32>
    %cst_5 = arith.constant 3.125000e-02 : f32
    %11 = vector.broadcast %cst_5 : f32 to vector<256x1xf32>
    %12 = arith.mulf %10, %11 : vector<256x1xf32>
    %13 = vector.broadcast %12 : vector<256x1xf32> to vector<256x128xf32>
    %14 = arith.subf %0, %13 : vector<256x128xf32>
    %15 = arith.mulf %14, %7 : vector<256x128xf32>
    %16 = arith.mulf %15, %15 : vector<256x128xf32>
    %cst_6 = arith.constant dense<0.000000e+00> : vector<256xf32>
    %17 = vector.multi_reduction <add>, %16, %cst_6 [1] : vector<256x128xf32> to vector<256xf32>
    %18 = vector.shape_cast %17 : vector<256xf32> to vector<256x1xf32>
    %cst_7 = arith.constant 3.125000e-02 : f32
    %19 = vector.broadcast %cst_7 : f32 to vector<256x1xf32>
    %20 = arith.mulf %18, %19 : vector<256x1xf32>
    %cst_8 = arith.constant 9.99999974E-6 : f32
    %21 = vector.broadcast %cst_8 : f32 to vector<256x1xf32>
    %22 = arith.addf %20, %21 : vector<256x1xf32>
    %23 = math.rsqrt %22 : vector<256x1xf32>
    %24 = vector.broadcast %23 : vector<256x1xf32> to vector<256x128xf32>
    %25 = arith.mulf %15, %24 : vector<256x128xf32>
    %26 = vector.broadcast %1 : vector<1x128xf32> to vector<256x128xf32>
    %27 = arith.mulf %25, %26 : vector<256x128xf32>
    %28 = vector.broadcast %2 : vector<1x128xf32> to vector<256x128xf32>
    %29 = arith.mulf %28, %7 : vector<256x128xf32>
    %30 = arith.addf %27, %29 : vector<256x128xf32>
    %31 = arith.truncf %30 : vector<256x128xf32> to vector<256x128xbf16>
    %c0_9 = arith.constant 0 : index
    %c0_10 = arith.constant 0 : index
    %32 = vector.load %arg4[%c0_9, %c0_10] : memref<128x128xbf16, #tpu.memory_space<vmem>>, vector<128x128xbf16>
    %cst_11 = arith.constant dense<0.000000e+00> : vector<256x128xf32>
    %33 = tpu.matmul %31, %32, %cst_11 {dimension_numbers = #tpu.dot_dimension_numbers<[1], [0], [0], [1], [0, 0, 1, 1], [], []>} : vector<256x128xbf16>, vector<128x128xbf16>, vector<256x128xf32> -> vector<256x128xf32>
    %c0_12 = arith.constant 0 : index
    %c0_13 = arith.constant 0 : index
    %34 = vector.load %arg5[%c0_12, %c0_13] : memref<1x128xf32, #tpu.memory_space<vmem>>, vector<1x128xf32>
    %35 = vector.broadcast %34 : vector<1x128xf32> to vector<256x128xf32>
    %36 = arith.addf %33, %35 : vector<256x128xf32>
    %cst_14 = arith.constant 5.000000e-01 : f32
    %37 = vector.broadcast %cst_14 : f32 to vector<256x128xf32>
    %38 = arith.mulf %37, %36 : vector<256x128xf32>
    %cst_15 = arith.constant 0.707106769 : f32
    %39 = vector.broadcast %cst_15 : f32 to vector<256x128xf32>
    %40 = arith.mulf %36, %39 : vector<256x128xf32>
    %41 = math.erf %40 : vector<256x128xf32>
    %cst_16 = arith.constant 1.000000e+00 : f32
    %42 = vector.broadcast %cst_16 : f32 to vector<256x128xf32>
    %43 = arith.addf %42, %41 : vector<256x128xf32>
    %44 = arith.mulf %38, %43 : vector<256x128xf32>
    %c0_17 = arith.constant 0 : index
    %c0_18 = arith.constant 0 : index
    %45 = vector.load %arg6[%c0_17, %c0_18] : memref<1x128xf32, #tpu.memory_space<vmem>>, vector<1x128xf32>
    %c0_19 = arith.constant 0 : index
    %c0_20 = arith.constant 0 : index
    %46 = vector.load %arg7[%c0_19, %c0_20] : memref<1x128xf32, #tpu.memory_space<vmem>>, vector<1x128xf32>
    %47 = tpu.iota {dimensions = array<i32: 1>} : vector<256x128xi32>
    %c64_i32 = arith.constant 64 : i32
    %48 = vector.broadcast %c64_i32 : i32 to vector<256x128xi32>
    %49 = arith.cmpi slt, %47, %48 : vector<256x128xi32>
    %50 = arith.extui %49 : vector<256x128xi1> to vector<256x128xi32>
    %51 = arith.sitofp %50 : vector<256x128xi32> to vector<256x128xf32>
    %52 = arith.mulf %44, %51 : vector<256x128xf32>
    %cst_21 = arith.constant dense<0.000000e+00> : vector<256xf32>
    %53 = vector.multi_reduction <add>, %52, %cst_21 [1] : vector<256x128xf32> to vector<256xf32>
    %54 = vector.shape_cast %53 : vector<256xf32> to vector<256x1xf32>
    %cst_22 = arith.constant 1.562500e-02 : f32
    %55 = vector.broadcast %cst_22 : f32 to vector<256x1xf32>
    %56 = arith.mulf %54, %55 : vector<256x1xf32>
    %57 = vector.broadcast %56 : vector<256x1xf32> to vector<256x128xf32>
    %58 = arith.subf %44, %57 : vector<256x128xf32>
    %59 = arith.mulf %58, %51 : vector<256x128xf32>
    %60 = arith.mulf %59, %59 : vector<256x128xf32>
    %cst_23 = arith.constant dense<0.000000e+00> : vector<256xf32>
    %61 = vector.multi_reduction <add>, %60, %cst_23 [1] : vector<256x128xf32> to vector<256xf32>
    %62 = vector.shape_cast %61 : vector<256xf32> to vector<256x1xf32>
    %cst_24 = arith.constant 1.562500e-02 : f32
    %63 = vector.broadcast %cst_24 : f32 to vector<256x1xf32>
    %64 = arith.mulf %62, %63 : vector<256x1xf32>
    %cst_25 = arith.constant 9.99999974E-6 : f32
    %65 = vector.broadcast %cst_25 : f32 to vector<256x1xf32>
    %66 = arith.addf %64, %65 : vector<256x1xf32>
    %67 = math.rsqrt %66 : vector<256x1xf32>
    %68 = vector.broadcast %67 : vector<256x1xf32> to vector<256x128xf32>
    %69 = arith.mulf %59, %68 : vector<256x128xf32>
    %70 = vector.broadcast %45 : vector<1x128xf32> to vector<256x128xf32>
    %71 = arith.mulf %69, %70 : vector<256x128xf32>
    %72 = vector.broadcast %46 : vector<1x128xf32> to vector<256x128xf32>
    %73 = arith.mulf %72, %51 : vector<256x128xf32>
    %74 = arith.addf %71, %73 : vector<256x128xf32>
    %75 = arith.truncf %74 : vector<256x128xf32> to vector<256x128xbf16>
    %c0_26 = arith.constant 0 : index
    %c0_27 = arith.constant 0 : index
    %76 = vector.load %arg8[%c0_26, %c0_27] : memref<128x128xbf16, #tpu.memory_space<vmem>>, vector<128x128xbf16>
    %cst_28 = arith.constant dense<0.000000e+00> : vector<256x128xf32>
    %77 = tpu.matmul %75, %76, %cst_28 {dimension_numbers = #tpu.dot_dimension_numbers<[1], [0], [0], [1], [0, 0, 1, 1], [], []>} : vector<256x128xbf16>, vector<128x128xbf16>, vector<256x128xf32> -> vector<256x128xf32>
    %78 = arith.truncf %77 : vector<256x128xf32> to vector<256x128xbf16>
    %c0_29 = arith.constant 0 : index
    %c0_30 = arith.constant 0 : index
    %79 = vector.load %arg9[%c0_29, %c0_30] : memref<256x128xbf16, #tpu.memory_space<vmem>>, vector<256x128xbf16>
    tpu.vector_store %arg9[%c0_29, %c0_30], %78 {strides = array<i32>} : memref<256x128xbf16, #tpu.memory_space<vmem>>, vector<256x128xbf16>,
    return
  }
  func.func @transform_0(%arg0: i32) -> (i32, i32) {
    %c0_i32 = arith.constant 0 : i32
    %c0_i32_0 = arith.constant 0 : i32
    return %arg0, %c0_i32 : i32, i32
  }
  func.func @transform_1(%arg0: i32) -> (i32, i32) {
    %c0_i32 = arith.constant 0 : i32
    %c0_i32_0 = arith.constant 0 : i32
    %c0_i32_1 = arith.constant 0 : i32
    return %c0_i32, %c0_i32_0 : i32, i32
  }
  func.func @transform_2(%arg0: i32) -> (i32, i32) {
    %c0_i32 = arith.constant 0 : i32
    %c0_i32_0 = arith.constant 0 : i32
    %c0_i32_1 = arith.constant 0 : i32
    return %c0_i32, %c0_i32_0 : i32, i32
  }
  func.func @transform_3(%arg0: i32) -> (i32, i32) {
    %c0_i32 = arith.constant 0 : i32
    %c0_i32_0 = arith.constant 0 : i32
    %c0_i32_1 = arith.constant 0 : i32
    return %c0_i32, %c0_i32_0 : i32, i32
  }
  func.func @transform_4(%arg0: i32) -> (i32, i32) {
    %c0_i32 = arith.constant 0 : i32
    %c0_i32_0 = arith.constant 0 : i32
    %c0_i32_1 = arith.constant 0 : i32
    return %c0_i32, %c0_i32_0 : i32, i32
  }
  func.func @transform_5(%arg0: i32) -> (i32, i32) {
    %c0_i32 = arith.constant 0 : i32
    %c0_i32_0 = arith.constant 0 : i32
    %c0_i32_1 = arith.constant 0 : i32
    return %c0_i32, %c0_i32_0 : i32, i32
  }
  func.func @transform_6(%arg0: i32) -> (i32, i32) {
    %c0_i32 = arith.constant 0 : i32
    %c0_i32_0 = arith.constant 0 : i32
    %c0_i32_1 = arith.constant 0 : i32
    return %c0_i32, %c0_i32_0 : i32, i32
  }
  func.func @transform_7(%arg0: i32) -> (i32, i32) {
    %c0_i32 = arith.constant 0 : i32
    %c0_i32_0 = arith.constant 0 : i32
    %c0_i32_1 = arith.constant 0 : i32
    return %c0_i32, %c0_i32_0 : i32, i32
  }
  func.func @transform_8(%arg0: i32) -> (i32, i32) {
    %c0_i32 = arith.constant 0 : i32
    %c0_i32_0 = arith.constant 0 : i32
    return %arg0, %c0_i32 : i32, i32
  }
}

</mosaic_0001>

<bundles_post_ra>
// kernel: tpu_custom_call.1
= control target key start
LH: loop header
LB: loop body
LE: loop exit
PB: predicated region body
PF: predicated region fallthrough
CT: control target
= control target key end

     0   :  { %6 = vsyncpa [#allocation3], 0  ;;  %s341_s0 = inlined_call_operand.hbm [shape: f32[8,128], index: 0, kind: input, shape index: {}]   ;;  %s342_s1 = inlined_call_operand.hbm [shape: f32[8,128], index: 1, kind: output, shape index: {}]  }
   0x1   :  { %7 = vsyncpa [#allocation4], 0  ;;  %s262_s6 = smov 0  }
   0x2 LB: > { %s145_s7 = sadd.s32 4294967295, %s248_s6   ;;  %p146_p0 = scmp.ge.s32.totalorder %s248_s6, 1  ;;  %s248_s6 = sphi %s262_s6, %s13_s6  }
   0x3   : > { %p60_p1 = scmp.lt.s32.totalorder %s248_s6, 3  ;;  %p276_p3 = scmp.eq.s32.totalorder %s145_s7, 0 }
   0x4   : > { %s250_s10 = smov [#allocation2]   ;;  %s180_s15 = scalar_lea.hbm %s341_s0, 128 }
   0x5   : > { %p270_p2 = pnand %p146_p0, %p60_p1  ;;  %s73_s11 = sshll.u32 %s250_s10, 4  ;;  %s74_s11 = int_to_ptr.vmem [resolvable:$true] %s73_s11 }
   0x6   : > { %s347_s9 = scalar_select %p276_p3, 1, 0 }
   0x7   : > { %s346_s8 = scalar_select %p270_p2, 1, 0 }
   0x8   : > { %p162_p4 = pneg %p270_p2  ;;  %p181_p6 = scmp.ne.s32.totalorder %s341_s0, %s180_s15 }
   0x9   : > { %p187_p10 = scmp.lt.u32.totalorder %s180_s15, %s341_s0 }
   0xa   : > { %p284_p5 = pnand %p276_p3, %p162_p4 }
   0xc   : > { %p182_p7 = pneg %p284_p5 }
   0xe   : > { %p183_p8 = pnand %p182_p7, %p181_p6 }
  0x10   : > { %p184_p9 = pneg %p183_p8 }
  0x12   : > { %p189_p11 = pnand %p187_p10, %p184_p9 }
  0x14   : > { %192 = shalt.err (!%p189_p11)
}
  0x15   : > { %s193_s20 = scalar_lea.vmem %s74_s11, 128  ;;  %p201_p1 = scmp.lt.s32.totalorder %s74_s11, %s74_s11 }
  0x16   : > { %p194_p12 = scmp.ne.s32.totalorder %s74_s11, %s193_s20  ;;  %p202_p4 = scmp.lt.s32.totalorder %s193_s20, %s193_s20 }
  0x18   : > { %p196_p13 = pnand %p194_p12, %p182_p7  ;;  %p203_p3 = por %p202_p4, %p201_p1 }
  0x1a   : > { %p197_p0 = pneg %p196_p13 }
  0x1c   : > { %p204_p2 = pnand %p203_p3, %p197_p0 }
  0x1e   : > { %207 = shalt.err (!%p204_p2)
}
  0x1f   : > { %165 = dma.hbm_to_vmem [thread:$0]  (!%p284_p5), %s341_s0, 128, %s74_s11, [#allocation3]  }
  0x20   : > { %p349_p6 = scmp.ne.s32.totalorder %s346_s8, 0 }
  0x21   : > { %p350_p8 = scmp.ne.s32.totalorder (!%p349_p6), %s347_s9, 0 }
  0x22   : > { %86 = sbr.rel (%p349_p6) target bundleno = 67 (0x43), region = 24 }
  0x29   : > { %239 = dma.done.wait (%p350_p8), [#allocation3], 128  }
  0x2a   : > { %241 = vsyncadd (%p350_p8), [#allocation3], 4294967168  ;;  %s251_s23 = smov [#allocation5]   ;;  %v96_v0 = vld [vmem:[#allocation2] sm:$0xff]  ;;  %p312_p2 = scmp.eq.s32.totalorder %s145_s7, 1 }
  0x2b   : > { %s106_s24 = sshll.u32 %s251_s23, 4  ;;  %v97_v1 = vadd.f32 1.0, %v96_v0  ;;  %s107_s24 = int_to_ptr.vmem [resolvable:$true] %s106_s24 }
  0x2c   : > { %s208_s26 = scalar_lea.vmem %s107_s24, 128  ;;  %p215_p9 = scmp.lt.s32.totalorder %s107_s24, %s107_s24 }
  0x2d   : > { %98 = vst [vmem:[#allocation5] sm:$0xff] %v97_v1  ;;  %p209_p3 = scmp.ne.s32.totalorder %s107_s24, %s208_s26  ;;  %p216_p10 = scmp.lt.s32.totalorder %s208_s26, %s208_s26 }
  0x2f   : > { %p210_p5 = pnand %p209_p3, %p312_p2  ;;  %p217_p11 = por %p216_p10, %p215_p9 }
  0x31   : > { %p211_p7 = pneg %p210_p5 }
  0x33   : > { %p218_p12 = pnand %p217_p11, %p211_p7 }
  0x35   : > { %221 = shalt.err (!%p218_p12)
}
  0x36   : > { %s222_s29 = scalar_lea.hbm %s342_s1, 128 }
  0x37   : > { %p223_p13 = scmp.ne.s32.totalorder %s342_s1, %s222_s29  ;;  %p228_p4 = scmp.lt.u32.totalorder %s222_s29, %s342_s1 }
  0x39   : > { %p224_p0 = pnand %p223_p13, %p312_p2 }
  0x3b   : > { %p225_p1 = pneg %p224_p0 }
  0x3d   : > { %p230_p6 = pnand %p228_p4, %p225_p1 }
  0x3f   : > { %233 = shalt.err (!%p230_p6)
}
  0x40   : > { %159 = dma.vmem_to_hbm [thread:$0]  (%p312_p2), %s107_s24, 128, %s342_s1, [#allocation4]  }
  0x41   : > { %243 = dma.done.wait (%p312_p2), [#allocation4], 128  }
  0x42   : > { %245 = vsyncadd (%p312_p2), [#allocation4], 4294967168 }
  0x43 PF: > { %s13_s6 = sadd.s32 1, %s248_s6  }
  0x44   : > { %p10_p8 = scmp.ge.s32.totalorder %s13_s6, 4  }
  0x46   :  { %12 = sbr.rel (!%p10_p8) target bundleno = 2 (0x2), region = 53 }
  0x4d   :  { %119 = vsyncpa [#allocation3], 1 }
  0x4e   :  { %121 = vsyncpa [#allocation3 + $0x1], 1 }
  0x4f   :  { %122 = vsyncpa [#allocation4], 1 }
  0x50   :  { %124 = vsyncpa [#allocation4 + $0x1], 1 }

// kernel: tpu_custom_call.1
= control target key start
LH: loop header
LB: loop body
LE: loop exit
PB: predicated region body
PF: predicated region fallthrough
CT: control target
= control target key end

     0   :  { %13 = vsyncpa [#allocation3], 0  ;;  %s4411_s0 = inlined_call_operand.hbm [shape: f32[1024,128], index: 0, kind: input, shape index: {}]   ;;  %s4412_s1 = inlined_call_operand.vmem [shape: f32[1,128], index: 1, kind: input, shape index: {}]   ;;  %s4413_s2 = inlined_call_operand.vmem [shape: f32[1,128], index: 2, kind: input, shape index: {}]   ;;  %s4414_s3 = inlined_call_operand.hbm [shape: bf16[128,128], index: 3, kind: input, shape index: {}]   ;;  %s4415_s4 = inlined_call_operand.vmem [shape: f32[1,128], index: 4, kind: input, shape index: {}]   ;;  %s4416_s5 = inlined_call_operand.vmem [shape: f32[1,128], index: 5, kind: input, shape index: {}]   ;;  %s4417_s6 = inlined_call_operand.vmem [shape: f32[1,128], index: 6, kind: input, shape index: {}]   ;;  %s4418_s7 = inlined_call_operand.hbm [shape: bf16[128,128], index: 7, kind: input, shape index: {}]   ;;  %s4419_s8 = inlined_call_operand.hbm [shape: bf16[1024,128], index: 8, kind: output, shape index: {}]  }
   0x1   :  { %15 = vsyncpa [#allocation3 + $0x1], 0 }
   0x2   :  { %16 = vsyncpa [#allocation6], 0 }
   0x3   :  { %17 = vsyncpa [#allocation4], 0 }
   0x4   :  { %19 = vsyncpa [#allocation4 + $0x1], 0  ;;  %s3143_s27 = smov 0   ;;  %s3145_s28 = smov 0  }
   0x5   :  { %s3147_s29 = smov 0   ;;  %s3149_s30 = smov 0  }
   0x6 LB: > { %s3164_s9 = sadd.s32 4294967295, %s3085_s30   ;;  %s2301_s10 = sadd.s32 4294967294, %s3085_s30   ;;  %s3085_s30 = sphi %s3149_s30, %s4438_s30   ;;  %s3081_s29 = sphi %s3147_s29, %s4437_s29   ;;  %s3077_s28 = sphi %s3145_s28, %s4436_s28   ;;  %s3073_s27 = sphi %s3143_s27, %s4435_s27  }
   0x7   : > { %p45_p0 = scmp.ne.s32.totalorder %s3077_s28, %s3073_s27  ;;  %p4420_p1 = scmp.eq.s32.totalorder %s3164_s9, 0 }
   0x8   : > { %p222_p3 = scmp.eq.s32.totalorder %s2301_s10, 3  ;;  %p2302_p5 = scmp.ge.s32.totalorder %s3085_s30, 1 }
   0x9   : > { %p3173_p4 = por %p4420_p1, %p45_p0  ;;  %p229_p7 = scmp.lt.s32.totalorder %s3085_s30, 5 }
   0xa   : > { %p3178_p6 = por %p222_p3, %p45_p0  ;;  %s3087_s14 = smov [#allocation5]  }
   0xb   : > { %s4423_s11 = scalar_select %p3173_p4, 1, 0 }
   0xc   : > { %s4424_s12 = scalar_select %p3178_p6, 1, 0 }
   0xd   : > { %p3183_p8 = pnand %p2302_p5, %p229_p7  ;;  %s247_s15 = sshll.u32 %s3087_s14, 4  ;;  %s248_s15 = int_to_ptr.vmem [resolvable:$true] %s247_s15 }
   0xe   : > { %s3088_s17 = smov [#allocation7]   ;;  %s2929_s21 = scalar_lea.hbm %s4414_s3, 1024 }
   0xf   : > { %s4425_s13 = scalar_select %p3183_p8, 1, 0 }
  0x10   : > { %p2659_p9 = pneg %p3183_p8  ;;  %s269_s18 = sshll.u32 %s3088_s17, 4  ;;  %s3195_s18 = int_to_ptr.vmem [resolvable:$true] %s269_s18 }
  0x11   : > { %p2930_p11 = scmp.ne.s32.totalorder %s4414_s3, %s2929_s21  ;;  %p2936_p3 = scmp.lt.u32.totalorder %s2929_s21, %s4414_s3 }
  0x12   : > { %p3191_p10 = pnand %p2659_p9, %p4420_p1 }
  0x14   : > { %p2931_p12 = pneg %p3191_p10 }
  0x16   : > { %p2932_p13 = pnand %p2931_p12, %p2930_p11 }
  0x18   : > { %p2933_p0 = pneg %p2932_p13 }
  0x1a   : > { %p2938_p5 = pnand %p2936_p3, %p2933_p0 }
  0x1c   : > { %2941 = shalt.err (!%p2938_p5)
}
  0x1d   : > { %s2942_s26 = scalar_lea.vmem %s248_s15, 1024  ;;  %p2950_p2 = scmp.lt.s32.totalorder %s248_s15, %s248_s15 }
  0x1e   : > { %p2943_p7 = scmp.ne.s32.totalorder %s248_s15, %s2942_s26  ;;  %p2951_p6 = scmp.lt.s32.totalorder %s2942_s26, %s2942_s26 }
  0x20   : > { %p2945_p9 = pnand %p2943_p7, %p2931_p12  ;;  %p2952_p4 = por %p2951_p6, %p2950_p2 }
  0x22   : > { %p2946_p1 = pneg %p2945_p9 }
  0x24   : > { %p2953_p8 = pnand %p2952_p4, %p2946_p1 }
  0x26   : > { %2956 = shalt.err (!%p2953_p8)
}
  0x27   : > { %s3089_s10 = smov 64   ;;  %s3090_s14 = smov 4  }
  0x28   : > { %2662 = dma.hbm_to_vmem [thread:$0]  (!%p3191_p10), %s4414_s3, 1024, %s248_s15, [#allocation6], %s3089_s10, %s3089_s10, %s3090_s14  }
  0x29   : > { %s2957_s22 = scalar_lea.hbm %s4418_s7, 1024 }
  0x2a   : > { %p2958_p11 = scmp.ne.s32.totalorder %s4418_s7, %s2957_s22  ;;  %p2964_p4 = scmp.lt.u32.totalorder %s2957_s22, %s4418_s7 }
  0x2c   : > { %p2960_p1 = pnand %p2958_p11, %p2931_p12 }
  0x2e   : > { %p2961_p2 = pneg %p2960_p1 }
  0x30   : > { %p2966_p6 = pnand %p2964_p4, %p2961_p2 }
  0x32   : > { %2969 = shalt.err (!%p2966_p6)
}
  0x33   : > { %s2970_s15 = scalar_lea.vmem %s3195_s18, 1024  ;;  %p2978_p3 = scmp.lt.s32.totalorder %s3195_s18, %s3195_s18 }
  0x34   : > { %p2971_p8 = scmp.ne.s32.totalorder %s3195_s18, %s2970_s15  ;;  %p2979_p5 = scmp.lt.s32.totalorder %s2970_s15, %s2970_s15 }
  0x36   : > { %p2973_p13 = pnand %p2971_p8, %p2931_p12  ;;  %p2980_p7 = por %p2979_p5, %p2978_p3 }
  0x38   : > { %p2974_p0 = pneg %p2973_p13 }
  0x3a   : > { %p2981_p9 = pnand %p2980_p7, %p2974_p0 }
  0x3c   : > { %2984 = shalt.err (!%p2981_p9)
}
  0x3d   : > { %2665 = dma.hbm_to_vmem [thread:$0]  (!%p3191_p10), %s4418_s7, 1024, %s3195_s18, [#allocation6], %s3089_s10, %s3089_s10, %s3090_s14  }
  0x3e   : > { %s3245_s20 = sadd.s32 1, %s3085_s30   ;;  %s32_s16 = sadd.s32 1, %s3081_s29 }
  0x3f   : > { %s29_s21 = ssub.s32 %s3085_s30, %s3245_s20  ;;  %p39_p12 = scmp.ne.s32.totalorder %s3081_s29, %s3077_s28 }
  0x40   : > { %p30_p11 = scmp.eq.s32.totalorder %s29_s21, 0  ;;  %p40_p1 = scmp.eq.s32.totalorder %s3085_s30, 0 }
  0x41   : > { %p4427_p2 = scmp.eq.s32.totalorder %s3164_s9, 3  ;;  %p2676_p6 = scmp.lt.s32.totalorder %s3085_s30, 4 }
  0x42   : > { %s3261_s23 = scalar_select %p30_p11, %s3081_s29, %s32_s16  }
  0x43   : > { %p3255_p4 = por %p4427_p2, %p39_p12  ;;  %p41_p8 = por %p40_p1, %p39_p12 }
  0x44   : > { %s283_s24 = sand.u32 1, %s3081_s29   ;;  %s2374_s18 = sshll.u32 %s3085_s30, 12 }
  0x45   : > { %s2306_s25 = sshll.u32 %s283_s24, 8  ;;  %s3268_s26 = scalar_lea.hbm %s4411_s0, %s2374_s18 }
  0x46   : > { %s287_s15 = scalar_lea.vmem [#allocation2], %s2306_s25  ;;  %p3272_p10 = pnand %p2676_p6, %p41_p8 }
  0x47   : > { %s294_s17 = sshll.u32 %s287_s15, 4  ;;  %s3276_s16 = scalar_lea.sflag [#allocation3], %s283_s24  ;;  %s3270_s17 = int_to_ptr.vmem [resolvable:$true] %s294_s17 }
  0x48   : > { %s2985_s21 = scalar_lea.hbm %s3268_s26, 4096  ;;  %p2987_p0 = pneg %p3272_p10 }
  0x49   : > { %p2986_p13 = scmp.ne.s32.totalorder %s3268_s26, %s2985_s21  ;;  %s2990_s10 = scalar_lea.hbm %s4411_s0, 16384 }
  0x4a   : > { %p2991_p7 = scmp.lt.u32.totalorder %s3268_s26, %s4411_s0  ;;  %p2992_p9 = scmp.lt.u32.totalorder %s2990_s10, %s2985_s21 }
  0x4b   : > { %p2988_p3 = pnand %p2987_p0, %p2986_p13  ;;  %p2994_p11 = scmp.lt.u32.totalorder %s2985_s21, %s3268_s26 }
  0x4c   : > { %p2993_p12 = por %p2992_p9, %p2991_p7 }
  0x4d   : > { %p2989_p5 = pneg %p2988_p3 }
  0x4e   : > { %p2995_p1 = por %p2994_p11, %p2993_p12 }
  0x50   : > { %p2996_p2 = pnand %p2995_p1, %p2989_p5 }
  0x52   : > { %2999 = shalt.err (!%p2996_p2)
}
  0x53   : > { %s3000_s24 = scalar_lea.vmem %s3270_s17, 4096  ;;  %s3091_s25 = smov [#allocation2]  }
  0x54   : > { %p3001_p6 = scmp.ne.s32.totalorder %s3270_s17, %s3000_s24  ;;  %s3005_s18 = sshll.u32 %s3091_s25, 4  ;;  %s3006_s18 = int_to_ptr.vmem [resolvable:$false] %s3005_s18 }
  0x55   : > { %s3007_s14 = scalar_lea.vmem %s3006_s18, 8192  ;;  %p3008_p3 = scmp.lt.s32.totalorder %s3270_s17, %s3006_s18 }
  0x56   : > { %p3003_p8 = pnand %p3001_p6, %p2987_p0  ;;  %p3009_p7 = scmp.lt.s32.totalorder %s3007_s14, %s3000_s24 }
  0x58   : > { %p3004_p13 = pneg %p3003_p8  ;;  %p3010_p9 = por %p3009_p7, %p3008_p3 }
  0x5a   : > { %p3011_p12 = pnand %p3010_p9, %p3004_p13 }
  0x5c   : > { %3014 = shalt.err (!%p3011_p12)
}
  0x5d   : > { %s3092_s21 = smov 128   ;;  %s3093_s10 = smov 8  }
  0x5e   : > { %2669 = dma.hbm_to_vmem [thread:$0]  (!%p3272_p10), %s3268_s26, 4096, %s3270_s17, %s3276_s16, %s3092_s21, %s3092_s21, %s3093_s10  }
  0x5f   : > { %p4430_p0 = scmp.ne.s32.totalorder %s4425_s13, 0 }
  0x60   : > { %s3307_s15 = sand.u32 (!%p4430_p0), 1, %s3077_s28   ;;  %p4431_p5 = scmp.ne.s32.totalorder (!%p4430_p0), %s4423_s11, 0 }
  0x61   : > { %306 = sbr.rel (%p4430_p0) target bundleno = 1282 (0x502), region = 52  ;;  %s2310_s24 = sshll.u32 (!%p4430_p0), %s3307_s15, 8 }
  0x62   : > { %s309_s25 = scalar_lea.sflag (!%p4430_p0), [#allocation3], %s3307_s15  ;;  %s3311_s18 = scalar_lea.vmem (!%p4430_p0), [#allocation2], %s2310_s24 }
  0x68   : > { %3060 = dma.done.wait (%p4431_p5), %s309_s25, 4096  }
  0x69   : > { %3062 = vsyncadd (%p4431_p5), %s309_s25, 4294963200  ;;  %p4432_p10 = scmp.eq.s32.totalorder %s3164_s9, 0 }
  0x6b   : > { %3064 = dma.done.wait (%p4432_p10), [#allocation6], 2048   ;;  %p4433_p11 = pmov %p4432_p10 }
  0x6c   : > { %v390_v0 = vlaneseq  ;;  %v3094_v2 = vmov 0.0   ;;  %v3328_v4 = vld [vmem:[%s3311_s18] sm:$0xff]  ;;  %v3331_v5 = vld [vmem:[%s3311_s18 + $0x10] sm:$0xff]  ;;  %v3334_v6 = vld [vmem:[%s3311_s18 + $0x8] sm:$0xff]  ;;  %s2313_s25 = sshll.u32 %s3307_s15, 7  ;;  %s2407_s11 = sshll.u32 %s3164_s9, 11 }
  0x6d   : > { %3066 = vsyncadd (%p4433_p11), [#allocation6], 4294965248  ;;  %v3341_v9 = vld [vmem:[%s3311_s18 + $0x18] sm:$0xff]  ;;  %v3348_v12 = vld [vmem:[%s3311_s18 + $0x20] sm:$0xff]  ;;  %s4364_s19 = scalar_lea.hbm %s4419_s8, %s2407_s11  ;;  %s2196_s16 = scalar_lea.sflag [#allocation4], %s3307_s15 }
  0x6e   : > { %v3321_v1 = vand.u32 127, %v390_v0  ;;  %v3351_v13 = vld [vmem:[%s3311_s18 + $0x28] sm:$0xff]  ;;  %v3358_v16 = vld [vmem:[%s3311_s18 + $0x30] sm:$0xff]  ;;  %v3361_v17 = vld [vmem:[%s3311_s18 + $0x38] sm:$0xff]  ;;  %s3095_s14 = smov [#allocation8]  }
  0x6f   : > { %v3364_v18 = vld [vmem:[%s3311_s18 + $0x40] sm:$0xff]  ;;  %v3367_v19 = vld [vmem:[%s3311_s18 + $0x48] sm:$0xff]  ;;  %v3374_v22 = vld [vmem:[%s3311_s18 + $0x50] sm:$0xff]  ;;  %s3019_s21 = sshll.u32 %s3095_s14, 4  ;;  %s3020_s21 = int_to_ptr.vmem [resolvable:$false] %s3019_s21 }
  0x70   : > { %vm392_vm0 = vcmp.lt.s32.totalorder %v3321_v1, 32  ;;  %v3377_v23 = vld [vmem:[%s3311_s18 + $0x58] sm:$0xff]  ;;  %v3384_v26 = vld [vmem:[%s3311_s18 + $0x60] sm:$0xff]  ;;  %v3387_v27 = vld [vmem:[%s3311_s18 + $0x68] sm:$0xff]  ;;  %vm1298_vm1 = vcmp.lt.s32.totalorder %v3321_v1, 64  ;;  %s3021_s10 = scalar_lea.vmem %s3020_s21, 4096 }
  0x71   : > { %v3325_v3 = vsel %vm392_vm0, 1.0, %v3094_v2  ;;  %v3398_v32 = vld [vmem:[%s3311_s18 + $0x70] sm:$0xff]  ;;  %v3401_v33 = vld [vmem:[%s3311_s18 + $0x78] sm:$0xff]  ;;  %v3408_v36 = vld [vmem:[%s3311_s18 + $0x80] sm:$0xff] }
  0x72   : > { %v395_v7 = vmul.f32 %v3325_v3, %v3328_v4  ;;  %v397_v8 = vmul.f32 %v3325_v3, %v3331_v5  ;;  %v396_v10 = vmul.f32 %v3325_v3, %v3334_v6  ;;  %v398_v11 = vmul.f32 %v3325_v3, %v3341_v9  ;;  %v3411_v37 = vld [vmem:[%s3311_s18 + $0x88] sm:$0xff]  ;;  %v3418_v40 = vld [vmem:[%s3311_s18 + $0x90] sm:$0xff]  ;;  %v3421_v41 = vld [vmem:[%s3311_s18 + $0x98] sm:$0xff] }
  0x73   : > { %v399_v14 = vmul.f32 %v3325_v3, %v3348_v12  ;;  %v400_v15 = vmul.f32 %v3325_v3, %v3351_v13  ;;  %v401_v20 = vmul.f32 %v3325_v3, %v3358_v16  ;;  %v402_v21 = vmul.f32 %v3325_v3, %v3361_v17  ;;  %v3428_v44 = vld [vmem:[%s3311_s18 + $0xa0] sm:$0xff]  ;;  %v3431_v45 = vld [vmem:[%s3311_s18 + $0xa8] sm:$0xff]  ;;  %v3438_v48 = vld [vmem:[%s3311_s18 + $0xb0] sm:$0xff] }
  0x74   : > { %427 = vadd.xlane.f32.xlu0 %v395_v7  ;;  %431 = vadd.xlane.f32.xlu1 %v397_v8  ;;  %v403_v24 = vmul.f32 %v3325_v3, %v3364_v18  ;;  %v404_v25 = vmul.f32 %v3325_v3, %v3367_v19  ;;  %v405_v28 = vmul.f32 %v3325_v3, %v3374_v22  ;;  %v3441_v49 = vld [vmem:[%s3311_s18 + $0xb8] sm:$0xff]  ;;  %v3448_v52 = vld [vmem:[%s3311_s18 + $0xc0] sm:$0xff]  ;;  %v3451_v53 = vld [vmem:[%s3311_s18 + $0xc8] sm:$0xff] }
  0x75   : > { %v406_v29 = vmul.f32 %v3325_v3, %v3377_v23  ;;  %v407_v30 = vmul.f32 %v3325_v3, %v3384_v26  ;;  %v408_v31 = vmul.f32 %v3325_v3, %v3387_v27  ;;  %v409_v34 = vmul.f32 %v3325_v3, %v3398_v32  ;;  %v3458_v56 = vld [vmem:[%s3311_s18 + $0xd0] sm:$0xff]  ;;  %v3461_v57 = vld [vmem:[%s3311_s18 + $0xd8] sm:$0xff]  ;;  %v3468_v60 = vld [vmem:[%s3311_s18 + $0xe0] sm:$0xff] }
  0x76   : > { %v410_v35 = vmul.f32 %v3325_v3, %v3401_v33  ;;  %v411_v38 = vmul.f32 %v3325_v3, %v3408_v36  ;;  %v412_v39 = vmul.f32 %v3325_v3, %v3411_v37  ;;  %v413_v42 = vmul.f32 %v3325_v3, %v3418_v40  ;;  %v3471_v61 = vld [vmem:[%s3311_s18 + $0xe8] sm:$0xff]  ;;  %v3478_v0 = vld [vmem:[%s3311_s18 + $0xf0] sm:$0xff]  ;;  %v3481_v7 = vld [vmem:[%s3311_s18 + $0xf8] sm:$0xff]  ;;  %s4343_s18 = scalar_lea.vmem [#allocation8], %s2313_s25 }
  0x77   : > { %v414_v43 = vmul.f32 %v3325_v3, %v3421_v41  ;;  %v415_v46 = vmul.f32 %v3325_v3, %v3428_v44  ;;  %v416_v47 = vmul.f32 %v3325_v3, %v3431_v45  ;;  %v417_v50 = vmul.f32 %v3325_v3, %v3438_v48  ;;  %s2209_s13 = sshll.u32 %s4343_s18, 4  ;;  %s4366_s13 = int_to_ptr.vmem [resolvable:$true] %s2209_s13 }
  0x78   : > { %429 = vadd.xlane.f32.xlu0 %v396_v10  ;;  %433 = vadd.xlane.f32.xlu1 %v398_v11  ;;  %v418_v51 = vmul.f32 %v3325_v3, %v3441_v49  ;;  %v419_v54 = vmul.f32 %v3325_v3, %v3448_v52  ;;  %v420_v55 = vmul.f32 %v3325_v3, %v3451_v53  ;;  %v2721_v11 = vld [vmem:[#allocation5] sm:$0xff]   ;;  %s3015_s9 = scalar_lea.vmem %s4366_s13, 2048  ;;  %p3022_p8 = scmp.lt.s32.totalorder %s4366_s13, %s3020_s21 }
  0x79   : > { %v421_v58 = vmul.f32 %v3325_v3, %v3458_v56  ;;  %v422_v59 = vmul.f32 %v3325_v3, %v3461_v57  ;;  %v423_v62 = vmul.f32 %v3325_v3, %v3468_v60  ;;  %v424_v63 = vmul.f32 %v3325_v3, %v3471_v61  ;;  %2551 = vmatprep.subr.bf16.mxu0 %v2721_v11  ;;  %p3016_p1 = scmp.ne.s32.totalorder %s4366_s13, %s3015_s9  ;;  %p3023_p13 = scmp.lt.s32.totalorder %s3021_s10, %s3015_s9 }
  0x7a   : > { %v425_v8 = vmul.f32 %v3325_v3, %v3478_v0  ;;  %v426_v10 = vmul.f32 %v3325_v3, %v3481_v7  ;;  %2552 = vmatpush3.bf16.msra.mxu0 %v2721_v11 }
  0x7b   : > { %p3017_p2 = pnand %p3016_p1, %p3255_p4  ;;  %p3024_p3 = por %p3023_p13, %p3022_p8 }
  0x7c   : > { %435 = vadd.xlane.f32.xlu0 %v399_v14  ;;  %437 = vadd.xlane.f32.xlu1 %v400_v15 }
  0x7d   : > { %p3018_p6 = pneg %p3017_p2 }
  0x7f   : > { %p3025_p7 = pnand %p3024_p3, %p3018_p6 }
  0x80   : > { %439 = vadd.xlane.f32.xlu0 %v401_v20  ;;  %441 = vadd.xlane.f32.xlu1 %v402_v21 }
  0x84   : > { %443 = vadd.xlane.f32.xlu0 %v403_v24  ;;  %445 = vadd.xlane.f32.xlu1 %v404_v25 }
  0x88   : > { %447 = vadd.xlane.f32.xlu0 %v405_v28  ;;  %449 = vadd.xlane.f32.xlu1 %v406_v29 }
  0x8c   : > { %451 = vadd.xlane.f32.xlu0 %v407_v30  ;;  %453 = vadd.xlane.f32.xlu1 %v408_v31 }
  0x90   : > { %455 = vadd.xlane.f32.xlu0 %v409_v34  ;;  %457 = vadd.xlane.f32.xlu1 %v410_v35 }
  0x94   : > { %459 = vadd.xlane.f32.xlu0 %v411_v38  ;;  %461 = vadd.xlane.f32.xlu1 %v412_v39 }
  0x98   : > { %463 = vadd.xlane.f32.xlu0 %v413_v42  ;;  %465 = vadd.xlane.f32.xlu1 %v414_v43 }
  0x9c   : > { %467 = vadd.xlane.f32.xlu0 %v415_v46  ;;  %469 = vadd.xlane.f32.xlu1 %v416_v47 }
  0xa0   : > { %471 = vadd.xlane.f32.xlu0 %v417_v50  ;;  %473 = vadd.xlane.f32.xlu1 %v418_v51 }
  0xa4   : > { %475 = vadd.xlane.f32.xlu0 %v419_v54  ;;  %477 = vadd.xlane.f32.xlu1 %v420_v55 }
  0xa8   : > { %479 = vadd.xlane.f32.xlu0 %v421_v58  ;;  %481 = vadd.xlane.f32.xlu1 %v422_v59 }
  0xac   : > { %483 = vadd.xlane.f32.xlu0 %v423_v62  ;;  %485 = vadd.xlane.f32.xlu1 %v424_v63 }
  0xb0   : > { %487 = vadd.xlane.f32.xlu0 %v425_v8  ;;  %489 = vadd.xlane.f32.xlu1 %v426_v10 }
 0x101   : > { %v428_v14 = vpop.xlane.xlu0 %427  ;;  %v432_v15 = vpop.xlane.xlu1 %431 }
 0x102   : > { %v491_v20 = vmul.f32 0.03125, %v428_v14  ;;  %v493_v21 = vmul.f32 0.03125, %v432_v15 }
 0x104   : > { %v523_v24 = vsub.f32 %v3328_v4, %v491_v20  ;;  %v525_v25 = vsub.f32 %v3331_v5, %v493_v21 }
 0x105   : > { %v430_v28 = vpop.xlane.xlu0 %429  ;;  %v434_v29 = vpop.xlane.xlu1 %433 }
 0x106   : > { %v492_v30 = vmul.f32 0.03125, %v430_v28  ;;  %v494_v31 = vmul.f32 0.03125, %v434_v29  ;;  %v3490_v34 = vmul.f32 %v3325_v3, %v523_v24  ;;  %v3493_v35 = vmul.f32 %v3325_v3, %v525_v25 }
 0x108   : > { %v524_v38 = vsub.f32 %v3334_v6, %v492_v30  ;;  %v526_v39 = vsub.f32 %v3341_v9, %v494_v31  ;;  %v587_v42 = vmul.f32 %v3490_v34, %v3490_v34  ;;  %v589_v5 = vmul.f32 %v3493_v35, %v3493_v35 }
 0x109   : > { %v436_v4 = vpop.xlane.xlu0 %435  ;;  %v438_v43 = vpop.xlane.xlu1 %437 }
 0x10a   : > { %v495_v46 = vmul.f32 0.03125, %v436_v4  ;;  %619 = vadd.xlane.f32.xlu0 %v587_v42  ;;  %v496_v47 = vmul.f32 0.03125, %v438_v43  ;;  %v3502_v50 = vmul.f32 %v3325_v3, %v524_v38  ;;  %v3505_v51 = vmul.f32 %v3325_v3, %v526_v39 }
 0x10c   : > { %v527_v6 = vsub.f32 %v3348_v12, %v495_v46  ;;  %v528_v9 = vsub.f32 %v3351_v13, %v496_v47  ;;  %v588_v54 = vmul.f32 %v3502_v50, %v3502_v50  ;;  %v590_v59 = vmul.f32 %v3505_v51, %v3505_v51 }
 0x10d   : > { %v440_v55 = vpop.xlane.xlu0 %439  ;;  %v442_v58 = vpop.xlane.xlu1 %441 }
 0x10e   : > { %v497_v62 = vmul.f32 0.03125, %v440_v55  ;;  %623 = vadd.xlane.f32.xlu0 %v589_v5  ;;  %621 = vadd.xlane.f32.xlu1 %v588_v54  ;;  %v498_v63 = vmul.f32 0.03125, %v442_v58  ;;  %v3514_v8 = vmul.f32 %v3325_v3, %v527_v6  ;;  %v3517_v10 = vmul.f32 %v3325_v3, %v528_v9  ;;  %v2722_v9 = vld [vmem:[#allocation5 + $0x8] sm:$0xff]  }
 0x10f   : > { %2553 = vmatprep.subr.bf16.mxu0 %v2722_v9 }
 0x110   : > { %v529_v12 = vsub.f32 %v3358_v16, %v497_v62  ;;  %v530_v13 = vsub.f32 %v3361_v17, %v498_v63  ;;  %v591_v11 = vmul.f32 %v3514_v8, %v3514_v8  ;;  %v592_v20 = vmul.f32 %v3517_v10, %v3517_v10  ;;  %2554 = vmatpush3.bf16.msra.mxu0 %v2722_v9 }
 0x111   : > { %v444_v14 = vpop.xlane.xlu0 %443  ;;  %v446_v15 = vpop.xlane.xlu1 %445 }
 0x112   : > { %v499_v21 = vmul.f32 0.03125, %v444_v14  ;;  %625 = vadd.xlane.f32.xlu1 %v590_v59  ;;  %627 = vadd.xlane.f32.xlu0 %v591_v11  ;;  %v500_v24 = vmul.f32 0.03125, %v446_v15  ;;  %v3526_v25 = vmul.f32 %v3325_v3, %v529_v12  ;;  %v3529_v28 = vmul.f32 %v3325_v3, %v530_v13 }
 0x114   : > { %v531_v16 = vsub.f32 %v3364_v18, %v499_v21  ;;  %v532_v17 = vsub.f32 %v3367_v19, %v500_v24  ;;  %v593_v29 = vmul.f32 %v3526_v25, %v3526_v25  ;;  %v594_v38 = vmul.f32 %v3529_v28, %v3529_v28 }
 0x115   : > { %v448_v30 = vpop.xlane.xlu0 %447  ;;  %v450_v31 = vpop.xlane.xlu1 %449 }
 0x116   : > { %v501_v39 = vmul.f32 0.03125, %v448_v30  ;;  %629 = vadd.xlane.f32.xlu1 %v592_v20  ;;  %631 = vadd.xlane.f32.xlu0 %v593_v29  ;;  %v502_v42 = vmul.f32 0.03125, %v450_v31  ;;  %v3538_v4 = vmul.f32 %v3325_v3, %v531_v16  ;;  %v3541_v43 = vmul.f32 %v3325_v3, %v532_v17 }
 0x118   : > { %v533_v18 = vsub.f32 %v3374_v22, %v501_v39  ;;  %v534_v19 = vsub.f32 %v3377_v23, %v502_v42  ;;  %v595_v5 = vmul.f32 %v3538_v4, %v3538_v4  ;;  %v596_v6 = vmul.f32 %v3541_v43, %v3541_v43 }
 0x119   : > { %v452_v46 = vpop.xlane.xlu0 %451  ;;  %v454_v47 = vpop.xlane.xlu1 %453 }
 0x11a   : > { %v503_v54 = vmul.f32 0.03125, %v452_v46  ;;  %633 = vadd.xlane.f32.xlu1 %v594_v38  ;;  %635 = vadd.xlane.f32.xlu0 %v595_v5  ;;  %v504_v55 = vmul.f32 0.03125, %v454_v47  ;;  %v3550_v58 = vmul.f32 %v3325_v3, %v533_v18  ;;  %v3553_v22 = vmul.f32 %v3325_v3, %v534_v19 }
 0x11c   : > { %v535_v23 = vsub.f32 %v3384_v26, %v503_v54  ;;  %v536_v59 = vsub.f32 %v3387_v27, %v504_v55  ;;  %v597_v62 = vmul.f32 %v3550_v58, %v3550_v58  ;;  %v598_v13 = vmul.f32 %v3553_v22, %v3553_v22  ;;  %v2723_v27 = vld [vmem:[#allocation5 + $0x10] sm:$0xff]  }
 0x11d   : > { %v456_v63 = vpop.xlane.xlu0 %455  ;;  %v458_v12 = vpop.xlane.xlu1 %457  ;;  %2555 = vmatprep.subr.bf16.mxu0 %v2723_v27 }
 0x11e   : > { %v505_v11 = vmul.f32 0.03125, %v456_v63  ;;  %637 = vadd.xlane.f32.xlu1 %v596_v6  ;;  %639 = vadd.xlane.f32.xlu0 %v597_v62  ;;  %v506_v14 = vmul.f32 0.03125, %v458_v12  ;;  %v3562_v15 = vmul.f32 %v3325_v3, %v535_v23  ;;  %v3565_v26 = vmul.f32 %v3325_v3, %v536_v59 }
 0x11f   : > { %2556 = vmatpush3.bf16.msra.mxu0 %v2723_v27 }
 0x120   : > { %v537_v20 = vsub.f32 %v3398_v32, %v505_v11  ;;  %v538_v21 = vsub.f32 %v3401_v33, %v506_v14  ;;  %v599_v24 = vmul.f32 %v3562_v15, %v3562_v15  ;;  %v600_v29 = vmul.f32 %v3565_v26, %v3565_v26  ;;  %v2724_v33 = vld [vmem:[#allocation5 + $0x18] sm:$0xff]  }
 0x121   : > { %v460_v16 = vpop.xlane.xlu0 %459  ;;  %v462_v17 = vpop.xlane.xlu1 %461  ;;  %2557 = vmatprep.subr.bf16.mxu0 %v2724_v33 }
 0x122   : > { %v507_v30 = vmul.f32 0.03125, %v460_v16  ;;  %641 = vadd.xlane.f32.xlu1 %v598_v13  ;;  %643 = vadd.xlane.f32.xlu0 %v599_v24  ;;  %v508_v31 = vmul.f32 0.03125, %v462_v17  ;;  %v3574_v38 = vmul.f32 %v3325_v3, %v537_v20  ;;  %v3577_v32 = vmul.f32 %v3325_v3, %v538_v21 }
 0x123   : > { %2558 = vmatpush3.bf16.msra.mxu0 %v2724_v33 }
 0x124   : > { %v539_v39 = vsub.f32 %v3408_v36, %v507_v30  ;;  %v540_v42 = vsub.f32 %v3411_v37, %v508_v31  ;;  %v601_v18 = vmul.f32 %v3574_v38, %v3574_v38  ;;  %v602_v46 = vmul.f32 %v3577_v32, %v3577_v32  ;;  %v2725_v37 = vld [vmem:[#allocation5 + $0x20] sm:$0xff]  }
 0x125   : > { %v464_v19 = vpop.xlane.xlu0 %463  ;;  %v466_v5 = vpop.xlane.xlu1 %465  ;;  %2559 = vmatprep.subr.bf16.mxu0 %v2725_v37 }
 0x126   : > { %v509_v47 = vmul.f32 0.03125, %v464_v19  ;;  %645 = vadd.xlane.f32.xlu1 %v600_v29  ;;  %647 = vadd.xlane.f32.xlu0 %v601_v18  ;;  %v510_v6 = vmul.f32 0.03125, %v466_v5  ;;  %v3586_v9 = vmul.f32 %v3325_v3, %v539_v39  ;;  %v3589_v36 = vmul.f32 %v3325_v3, %v540_v42 }
 0x127   : > { %2560 = vmatpush3.bf16.msra.mxu0 %v2725_v37 }
 0x128   : > { %v541_v54 = vsub.f32 %v3418_v40, %v509_v47  ;;  %v542_v55 = vsub.f32 %v3421_v41, %v510_v6  ;;  %v603_v23 = vmul.f32 %v3586_v9, %v3586_v9  ;;  %v604_v63 = vmul.f32 %v3589_v36, %v3589_v36  ;;  %v2726_v41 = vld [vmem:[#allocation5 + $0x28] sm:$0xff]  }
 0x129   : > { %v468_v59 = vpop.xlane.xlu0 %467  ;;  %v470_v62 = vpop.xlane.xlu1 %469  ;;  %2561 = vmatprep.subr.bf16.mxu0 %v2726_v41 }
 0x12a   : > { %v511_v12 = vmul.f32 0.03125, %v468_v59  ;;  %649 = vadd.xlane.f32.xlu1 %v602_v46  ;;  %651 = vadd.xlane.f32.xlu0 %v603_v23  ;;  %v512_v13 = vmul.f32 0.03125, %v470_v62  ;;  %v3598_v11 = vmul.f32 %v3325_v3, %v541_v54  ;;  %v3601_v40 = vmul.f32 %v3325_v3, %v542_v55 }
 0x12b   : > { %2562 = vmatpush3.bf16.msra.mxu0 %v2726_v41 }
 0x12c   : > { %v543_v14 = vsub.f32 %v3428_v44, %v511_v12  ;;  %v544_v27 = vsub.f32 %v3431_v45, %v512_v13  ;;  %v605_v20 = vmul.f32 %v3598_v11, %v3598_v11  ;;  %v606_v16 = vmul.f32 %v3601_v40, %v3601_v40  ;;  %v2727_v45 = vld [vmem:[#allocation5 + $0x30] sm:$0xff]  }
 0x12d   : > { %v472_v21 = vpop.xlane.xlu0 %471  ;;  %v474_v24 = vpop.xlane.xlu1 %473  ;;  %2563 = vmatprep.subr.bf16.mxu0 %v2727_v45 }
 0x12e   : > { %v513_v17 = vmul.f32 0.03125, %v472_v21  ;;  %653 = vadd.xlane.f32.xlu1 %v604_v63  ;;  %655 = vadd.xlane.f32.xlu0 %v605_v20  ;;  %v514_v29 = vmul.f32 0.03125, %v474_v24  ;;  %v3610_v30 = vmul.f32 %v3325_v3, %v543_v14  ;;  %v3613_v44 = vmul.f32 %v3325_v3, %v544_v27 }
 0x12f   : > { %2564 = vmatpush3.bf16.msra.mxu0 %v2727_v45 }
 0x130   : > { %v545_v31 = vsub.f32 %v3438_v48, %v513_v17  ;;  %v546_v33 = vsub.f32 %v3441_v49, %v514_v29  ;;  %v607_v39 = vmul.f32 %v3610_v30, %v3610_v30  ;;  %v608_v19 = vmul.f32 %v3613_v44, %v3613_v44  ;;  %v2728_v49 = vld [vmem:[#allocation5 + $0x38] sm:$0xff]  }
 0x131   : > { %v476_v42 = vpop.xlane.xlu0 %475  ;;  %v478_v18 = vpop.xlane.xlu1 %477  ;;  %2565 = vmatprep.subr.bf16.mxu0 %v2728_v49 }
 0x132   : > { %v515_v5 = vmul.f32 0.03125, %v476_v42  ;;  %657 = vadd.xlane.f32.xlu1 %v606_v16  ;;  %659 = vadd.xlane.f32.xlu0 %v607_v39  ;;  %v516_v46 = vmul.f32 0.03125, %v478_v18  ;;  %v3622_v47 = vmul.f32 %v3325_v3, %v545_v31  ;;  %v3625_v48 = vmul.f32 %v3325_v3, %v546_v33 }
 0x133   : > { %2566 = vmatpush3.bf16.msra.mxu0 %v2728_v49 }
 0x134   : > { %v547_v6 = vsub.f32 %v3448_v52, %v515_v5  ;;  %v548_v37 = vsub.f32 %v3451_v53, %v516_v46  ;;  %v609_v54 = vmul.f32 %v3622_v47, %v3622_v47  ;;  %v610_v59 = vmul.f32 %v3625_v48, %v3625_v48 }
 0x135   : > { %v480_v55 = vpop.xlane.xlu0 %479  ;;  %v482_v23 = vpop.xlane.xlu1 %481 }
 0x136   : > { %v517_v62 = vmul.f32 0.03125, %v480_v55  ;;  %661 = vadd.xlane.f32.xlu1 %v608_v19  ;;  %663 = vadd.xlane.f32.xlu0 %v609_v54  ;;  %v518_v63 = vmul.f32 0.03125, %v482_v23  ;;  %v3634_v12 = vmul.f32 %v3325_v3, %v547_v6  ;;  %v3637_v52 = vmul.f32 %v3325_v3, %v548_v37 }
 0x138   : > { %v549_v53 = vsub.f32 %v3458_v56, %v517_v62  ;;  %v550_v13 = vsub.f32 %v3461_v57, %v518_v63  ;;  %v611_v41 = vmul.f32 %v3634_v12, %v3634_v12  ;;  %v612_v20 = vmul.f32 %v3637_v52, %v3637_v52 }
 0x139   : > { %v484_v14 = vpop.xlane.xlu0 %483  ;;  %v486_v27 = vpop.xlane.xlu1 %485 }
 0x13a   : > { %v519_v21 = vmul.f32 0.03125, %v484_v14  ;;  %665 = vadd.xlane.f32.xlu1 %v610_v59  ;;  %667 = vadd.xlane.f32.xlu0 %v611_v41  ;;  %v520_v24 = vmul.f32 0.03125, %v486_v27  ;;  %v3646_v16 = vmul.f32 %v3325_v3, %v549_v53  ;;  %v3649_v17 = vmul.f32 %v3325_v3, %v550_v13 }
 0x13c   : > { %v551_v56 = vsub.f32 %v3468_v60, %v519_v21  ;;  %v552_v57 = vsub.f32 %v3471_v61, %v520_v24  ;;  %v613_v29 = vmul.f32 %v3646_v16, %v3646_v16  ;;  %v614_v33 = vmul.f32 %v3649_v17, %v3649_v17 }
 0x13d   : > { %v488_v45 = vpop.xlane.xlu0 %487  ;;  %v490_v31 = vpop.xlane.xlu1 %489 }
 0x13e   : > { %v521_v39 = vmul.f32 0.03125, %v488_v45  ;;  %669 = vadd.xlane.f32.xlu1 %v612_v20  ;;  %671 = vadd.xlane.f32.xlu0 %v613_v29  ;;  %v522_v42 = vmul.f32 0.03125, %v490_v31  ;;  %v3658_v18 = vmul.f32 %v3325_v3, %v551_v56  ;;  %v3661_v19 = vmul.f32 %v3325_v3, %v552_v57 }
 0x140   : > { %v553_v60 = vsub.f32 %v3478_v0, %v521_v39  ;;  %v554_v61 = vsub.f32 %v3481_v7, %v522_v42  ;;  %v615_v5 = vmul.f32 %v3658_v18, %v3658_v18  ;;  %v616_v46 = vmul.f32 %v3661_v19, %v3661_v19 }
 0x142   : > { %673 = vadd.xlane.f32.xlu1 %v614_v33  ;;  %675 = vadd.xlane.f32.xlu0 %v615_v5  ;;  %v3670_v49 = vmul.f32 %v3325_v3, %v553_v60  ;;  %v3673_v6 = vmul.f32 %v3325_v3, %v554_v61 }
 0x144   : > { %v617_v37 = vmul.f32 %v3670_v49, %v3670_v49  ;;  %v618_v0 = vmul.f32 %v3673_v6, %v3673_v6 }
 0x146   : > { %677 = vadd.xlane.f32.xlu1 %v616_v46  ;;  %679 = vadd.xlane.f32.xlu0 %v617_v37  ;;  %v3683_v37 = vld [vmem:[%s4412_s1] ss:$0 sm:$0xff] }
 0x14a   : > { %681 = vadd.xlane.f32.xlu1 %v618_v0  ;;  %v2316_v0 = vld [vmem:[%s4413_s2] ss:$0 sm:$0xff] }
 0x197   : > { %v620_v7 = vpop.xlane.xlu0 %619 }
 0x198   : > { %v683_v54 = vmul.f32 0.03125, %v620_v7 }
 0x19a   : > { %v715_v55 = vadd.f32 1e-05, %v683_v54 }
 0x19b   : > { %v622_v23 = vpop.xlane.xlu1 %621  ;;  %v624_v59 = vpop.xlane.xlu0 %623 }
 0x19c   : > { %2737 = vrsqrt.f32 %v715_v55  ;;  %v684_v62 = vmul.f32 0.03125, %v622_v23  ;;  %v685_v63 = vmul.f32 0.03125, %v624_v59 }
 0x19e   : > { %v716_v53 = vadd.f32 1e-05, %v684_v62  ;;  %v717_v13 = vadd.f32 1e-05, %v685_v63 }
 0x19f   : > { %v626_v41 = vpop.xlane.xlu1 %625  ;;  %v628_v14 = vpop.xlane.xlu0 %627 }
 0x1a0   : > { %2739 = vrsqrt.f32 %v716_v53  ;;  %v686_v27 = vmul.f32 0.03125, %v626_v41  ;;  %v687_v20 = vmul.f32 0.03125, %v628_v14  ;;  %v3691_v53 = vmul.f32 %v2316_v0, %v3325_v3 }
 0x1a1   : > { %2741 = vrsqrt.f32 %v717_v13 }
 0x1a2   : > { %v718_v21 = vadd.f32 1e-05, %v686_v27  ;;  %v719_v24 = vadd.f32 1e-05, %v687_v20 }
 0x1a3   : > { %v630_v56 = vpop.xlane.xlu1 %629  ;;  %v632_v57 = vpop.xlane.xlu0 %631 }
 0x1a4   : > { %2743 = vrsqrt.f32 %v718_v21  ;;  %v688_v29 = vmul.f32 0.03125, %v630_v56  ;;  %v689_v45 = vmul.f32 0.03125, %v632_v57 }
 0x1a5   : > { %2745 = vrsqrt.f32 %v719_v24 }
 0x1a6   : > { %v2738_v31 = vpop.eup %2737  ;;  %v720_v33 = vadd.f32 1e-05, %v688_v29  ;;  %v721_v39 = vadd.f32 1e-05, %v689_v45 }
 0x1a7   : > { %v634_v42 = vpop.xlane.xlu1 %633  ;;  %v636_v60 = vpop.xlane.xlu0 %635  ;;  %v779_v61 = vmul.f32 %v2738_v31, %v3490_v34 }
 0x1a8   : > { %2747 = vrsqrt.f32 %v720_v33  ;;  %v690_v5 = vmul.f32 0.03125, %v634_v42  ;;  %v691_v46 = vmul.f32 0.03125, %v636_v60 }
 0x1a9   : > { %2749 = vrsqrt.f32 %v721_v39  ;;  %v817_v63 = vmul.f32 %v3683_v37, %v779_v61 }
 0x1aa   : > { %v2740_v7 = vpop.eup %2739  ;;  %v722_v54 = vadd.f32 1e-05, %v690_v5  ;;  %v723_v55 = vadd.f32 1e-05, %v691_v46 }
 0x1ab   : > { %v2742_v23 = vpop.eup %2741  ;;  %v638_v59 = vpop.xlane.xlu1 %637  ;;  %v780_v34 = vmul.f32 %v2740_v7, %v3502_v50  ;;  %v856_v50 = vadd.f32 %v3691_v53, %v817_v63 }
 0x1ac   : > { %v640_v62 = vpop.xlane.xlu0 %639  ;;  %2751 = vrsqrt.f32 %v722_v54  ;;  %v692_v13 = vmul.f32 0.03125, %v638_v59  ;;  %v781_v14 = vmul.f32 %v2742_v23, %v3493_v35 }
 0x1ad   : > { %v693_v41 = vmul.f32 0.03125, %v640_v62  ;;  %2753 = vrsqrt.f32 %v723_v55  ;;  %v818_v27 = vmul.f32 %v3683_v37, %v780_v34 }
 0x1ae   : > { %v2744_v20 = vpop.eup %2743  ;;  %v724_v21 = vadd.f32 1e-05, %v692_v13  ;;  %v819_v31 = vmul.f32 %v3683_v37, %v781_v14 }
 0x1af   : > { %v725_v24 = vadd.f32 1e-05, %v693_v41  ;;  %v2746_v56 = vpop.eup %2745  ;;  %v642_v57 = vpop.xlane.xlu1 %641  ;;  %v857_v45 = vadd.f32 %v3691_v53, %v818_v27  ;;  %v782_v3 = vmul.f32 %v2744_v20, %v3505_v51 }
 0x1b0   : > { %v644_v29 = vpop.xlane.xlu0 %643  ;;  %2755 = vrsqrt.f32 %v724_v21  ;;  %v694_v33 = vmul.f32 0.03125, %v642_v57  ;;  %v783_v60 = vmul.f32 %v2746_v56, %v3514_v8  ;;  %v858_v51 = vadd.f32 %v3691_v53, %v819_v31 }
 0x1b1   : > { %v695_v35 = vmul.f32 0.03125, %v644_v29  ;;  %2757 = vrsqrt.f32 %v725_v24  ;;  %v888_v39 = vpack.c.bf16 %v857_v45, %v856_v50  ;;  %v820_v42 = vmul.f32 %v3683_v37, %v782_v3 }
 0x1b2   : > { %v2748_v61 = vpop.eup %2747  ;;  %v726_v5 = vadd.f32 1e-05, %v694_v33  ;;  %v821_v59 = vmul.f32 %v3683_v37, %v783_v60 }
 0x1b3   : > { %v727_v46 = vadd.f32 1e-05, %v695_v35  ;;  %v2750_v0 = vpop.eup %2749  ;;  %v646_v7 = vpop.xlane.xlu1 %645  ;;  %2567 = vmatprep.mubr.bf16.mxu0 %v888_v39  ;;  %v859_v55 = vadd.f32 %v3691_v53, %v820_v42  ;;  %v784_v23 = vmul.f32 %v2748_v61, %v3517_v10 }
 0x1b4   : > { %v648_v54 = vpop.xlane.xlu0 %647  ;;  %2759 = vrsqrt.f32 %v726_v5  ;;  %v696_v62 = vmul.f32 0.03125, %v646_v7  ;;  %v785_v8 = vmul.f32 %v2750_v0, %v3526_v25  ;;  %v860_v10 = vadd.f32 %v3691_v53, %v821_v59 }
 0x1b5   : > { %v697_v34 = vmul.f32 0.03125, %v648_v54  ;;  %2761 = vrsqrt.f32 %v727_v46  ;;  %v889_v63 = vpack.c.bf16 %v859_v55, %v858_v51  ;;  %v822_v13 = vmul.f32 %v3683_v37, %v784_v23 }
 0x1b6   : > { %v2752_v41 = vpop.eup %2751  ;;  %v728_v14 = vadd.f32 1e-05, %v696_v62  ;;  %v823_v29 = vmul.f32 %v3683_v37, %v785_v8 }
 0x1b7   : > { %v729_v27 = vadd.f32 1e-05, %v697_v34  ;;  %v2754_v20 = vpop.eup %2753  ;;  %v650_v21 = vpop.xlane.xlu1 %649  ;;  %2568 = vmatmul.mubr.bf16.vlgmr.msra.gmra.mrb[0].mxu0 %v889_v63  ;;  %v861_v56 = vadd.f32 %v3691_v53, %v822_v13  ;;  %v786_v57 = vmul.f32 %v2752_v41, %v3529_v28 }
 0x1b8   : > { %v652_v24 = vpop.xlane.xlu0 %651  ;;  %2763 = vrsqrt.f32 %v728_v14  ;;  %v698_v25 = vmul.f32 0.03125, %v650_v21  ;;  %v787_v31 = vmul.f32 %v2754_v20, %v3538_v4  ;;  %v862_v28 = vadd.f32 %v3691_v53, %v823_v29 }
 0x1b9   : > { %v699_v50 = vmul.f32 0.03125, %v652_v24  ;;  %2765 = vrsqrt.f32 %v729_v27  ;;  %v890_v45 = vpack.c.bf16 %v861_v56, %v860_v10  ;;  %v824_v3 = vmul.f32 %v3683_v37, %v786_v57 }
 0x1ba   : > { %v2756_v33 = vpop.eup %2755  ;;  %v730_v35 = vadd.f32 1e-05, %v698_v25  ;;  %v825_v0 = vmul.f32 %v3683_v37, %v787_v31 }
 0x1bb   : > { %v731_v39 = vadd.f32 1e-05, %v699_v50  ;;  %v2758_v42 = vpop.eup %2757  ;;  %v654_v60 = vpop.xlane.xlu1 %653  ;;  %2571 = vmatprep.mubr.bf16.mxu0 %v890_v45  ;;  %v863_v5 = vadd.f32 %v3691_v53, %v824_v3  ;;  %v788_v46 = vmul.f32 %v2756_v33, %v3541_v43 }
 0x1bc   : > { %v656_v61 = vpop.xlane.xlu0 %655  ;;  %2767 = vrsqrt.f32 %v730_v35  ;;  %v700_v7 = vmul.f32 0.03125, %v654_v60  ;;  %v789_v4 = vmul.f32 %v2758_v42, %v3550_v58  ;;  %v864_v43 = vadd.f32 %v3691_v53, %v825_v0 }
 0x1bd   : > { %v701_v54 = vmul.f32 0.03125, %v656_v61  ;;  %2769 = vrsqrt.f32 %v731_v39  ;;  %v891_v51 = vpack.c.bf16 %v863_v5, %v862_v28  ;;  %v826_v55 = vmul.f32 %v3683_v37, %v788_v46 }
 0x1be   : > { %v2760_v23 = vpop.eup %2759  ;;  %v732_v59 = vadd.f32 1e-05, %v700_v7  ;;  %v827_v14 = vmul.f32 %v3683_v37, %v789_v4 }
 0x1bf   : > { %v733_v62 = vadd.f32 1e-05, %v701_v54  ;;  %v2762_v34 = vpop.eup %2761  ;;  %v658_v8 = vpop.xlane.xlu1 %657  ;;  %2572 = vmatmul.mubr.bf16.gmra.mrb[4].mxu0 %v891_v51  ;;  %v865_v13 = vadd.f32 %v3691_v53, %v826_v55  ;;  %v790_v41 = vmul.f32 %v2760_v23, %v3553_v22 }
 0x1c0   : > { %v660_v63 = vpop.xlane.xlu0 %659  ;;  %2771 = vrsqrt.f32 %v732_v59  ;;  %v702_v58 = vmul.f32 0.03125, %v658_v8  ;;  %v791_v24 = vmul.f32 %v2762_v34, %v3562_v15  ;;  %v866_v22 = vadd.f32 %v3691_v53, %v827_v14 }
 0x1c1   : > { %v703_v27 = vmul.f32 0.03125, %v660_v63  ;;  %2773 = vrsqrt.f32 %v733_v62  ;;  %v892_v20 = vpack.c.bf16 %v865_v13, %v864_v43  ;;  %v828_v21 = vmul.f32 %v3683_v37, %v790_v41 }
 0x1c2   : > { %v2764_v10 = vpop.eup %2763  ;;  %v734_v56 = vadd.f32 1e-05, %v702_v58  ;;  %v829_v31 = vmul.f32 %v3683_v37, %v791_v24 }
 0x1c3   : > { %v735_v57 = vadd.f32 1e-05, %v703_v27  ;;  %v2766_v29 = vpop.eup %2765  ;;  %v662_v25 = vpop.xlane.xlu1 %661  ;;  %2575 = vmatprep.mubr.bf16.mxu0 %v892_v20  ;;  %v867_v45 = vadd.f32 %v3691_v53, %v828_v21  ;;  %v792_v3 = vmul.f32 %v2764_v10, %v3565_v26 }
 0x1c4   : > { %v664_v50 = vpop.xlane.xlu0 %663  ;;  %2775 = vrsqrt.f32 %v734_v56  ;;  %v704_v33 = vmul.f32 0.03125, %v662_v25  ;;  %v793_v15 = vmul.f32 %v2766_v29, %v3574_v38  ;;  %v868_v26 = vadd.f32 %v3691_v53, %v829_v31 }
 0x1c5   : > { %v705_v35 = vmul.f32 0.03125, %v664_v50  ;;  %2777 = vrsqrt.f32 %v735_v57  ;;  %v893_v39 = vpack.c.bf16 %v867_v45, %v866_v22  ;;  %v830_v42 = vmul.f32 %v3683_v37, %v792_v3 }
 0x1c6   : > { %v2768_v60 = vpop.eup %2767  ;;  %v736_v61 = vadd.f32 1e-05, %v704_v33  ;;  %v831_v4 = vmul.f32 %v3683_v37, %v793_v15 }
 0x1c7   : > { %v737_v28 = vadd.f32 1e-05, %v705_v35  ;;  %v2770_v5 = vpop.eup %2769  ;;  %v666_v46 = vpop.xlane.xlu1 %665  ;;  %2576 = vmatmul.mubr.bf16.gmra.mrb[8].mxu0 %v893_v39  ;;  %v869_v7 = vadd.f32 %v3691_v53, %v830_v42  ;;  %v794_v54 = vmul.f32 %v2768_v60, %v3577_v32 }
 0x1c8   : > { %v668_v0 = vpop.xlane.xlu0 %667  ;;  %2779 = vrsqrt.f32 %v736_v61  ;;  %v706_v38 = vmul.f32 0.03125, %v666_v46  ;;  %v795_v59 = vmul.f32 %v2770_v5, %v3586_v9  ;;  %v870_v32 = vadd.f32 %v3691_v53, %v831_v4 }
 0x1c9   : > { %v707_v51 = vmul.f32 0.03125, %v668_v0  ;;  %2781 = vrsqrt.f32 %v737_v28  ;;  %v894_v55 = vpack.c.bf16 %v869_v7, %v868_v26  ;;  %v832_v23 = vmul.f32 %v3683_v37, %v794_v54 }
 0x1ca   : > { %v2772_v62 = vpop.eup %2771  ;;  %v738_v34 = vadd.f32 1e-05, %v706_v38  ;;  %v833_v58 = vmul.f32 %v3683_v37, %v795_v59 }
 0x1cb   : > { %v739_v8 = vadd.f32 1e-05, %v707_v51  ;;  %v2774_v63 = vpop.eup %2773  ;;  %v670_v43 = vpop.xlane.xlu1 %669  ;;  %2579 = vmatprep.mubr.bf16.mxu0 %v894_v55  ;;  %v871_v41 = vadd.f32 %v3691_v53, %v832_v23  ;;  %v796_v14 = vmul.f32 %v2772_v62, %v3589_v36 }
 0x1cc   : > { %v672_v13 = vpop.xlane.xlu0 %671  ;;  %2783 = vrsqrt.f32 %v738_v34  ;;  %v708_v27 = vmul.f32 0.03125, %v670_v43  ;;  %v797_v9 = vmul.f32 %v2774_v63, %v3598_v11  ;;  %v872_v36 = vadd.f32 %v3691_v53, %v833_v58 }
 0x1cd   : > { %v709_v20 = vmul.f32 0.03125, %v672_v13  ;;  %2785 = vrsqrt.f32 %v739_v8  ;;  %v895_v21 = vpack.c.bf16 %v871_v41, %v870_v32  ;;  %v834_v24 = vmul.f32 %v3683_v37, %v796_v14 }
 0x1ce   : > { %v2776_v10 = vpop.eup %2775  ;;  %v740_v56 = vadd.f32 1e-05, %v708_v27  ;;  %v835_v3 = vmul.f32 %v3683_v37, %v797_v9 }
 0x1cf   : > { %v741_v57 = vadd.f32 1e-05, %v709_v20  ;;  %v2778_v29 = vpop.eup %2777  ;;  %v674_v25 = vpop.xlane.xlu1 %673  ;;  %2580 = vmatmul.mubr.bf16.gmra.mrb[12].mxu0 %v895_v21  ;;  %v873_v22 = vadd.f32 %v3691_v53, %v834_v24  ;;  %v798_v45 = vmul.f32 %v2776_v10, %v3601_v40 }
 0x1d0   : > { %v676_v50 = vpop.xlane.xlu0 %675  ;;  %2787 = vrsqrt.f32 %v740_v56  ;;  %v710_v11 = vmul.f32 0.03125, %v674_v25  ;;  %v799_v15 = vmul.f32 %v2778_v29, %v3610_v30  ;;  %v874_v40 = vadd.f32 %v3691_v53, %v835_v3 }
 0x1d1   : > { %v711_v31 = vmul.f32 0.03125, %v676_v50  ;;  %2789 = vrsqrt.f32 %v741_v57  ;;  %v896_v33 = vpack.c.bf16 %v873_v22, %v872_v36  ;;  %v836_v35 = vmul.f32 %v3683_v37, %v798_v45 }
 0x1d2   : > { %v2780_v39 = vpop.eup %2779  ;;  %v742_v42 = vadd.f32 1e-05, %v710_v11  ;;  %v837_v26 = vmul.f32 %v3683_v37, %v799_v15 }
 0x1d3   : > { %v743_v60 = vadd.f32 1e-05, %v711_v31  ;;  %v2782_v61 = vpop.eup %2781  ;;  %v678_v28 = vpop.xlane.xlu1 %677  ;;  %2583 = vmatprep.mubr.bf16.mxu0 %v896_v33  ;;  %v875_v46 = vadd.f32 %v3691_v53, %v836_v35  ;;  %v800_v0 = vmul.f32 %v2780_v39, %v3613_v44 }
 0x1d4   : > { %v680_v5 = vpop.xlane.xlu0 %679  ;;  %2791 = vrsqrt.f32 %v742_v42  ;;  %v712_v7 = vmul.f32 0.03125, %v678_v28  ;;  %v801_v30 = vmul.f32 %v2782_v61, %v3622_v47  ;;  %v876_v34 = vadd.f32 %v3691_v53, %v837_v26 }
 0x1d5   : > { %v713_v54 = vmul.f32 0.03125, %v680_v5  ;;  %2793 = vrsqrt.f32 %v743_v60  ;;  %v897_v4 = vpack.c.bf16 %v875_v46, %v874_v40  ;;  %v838_v38 = vmul.f32 %v3683_v37, %v800_v0  ;;  %v3789_v46 = vld [vmem:[%s4415_s4] ss:$0 sm:$0xff] }
 0x1d6   : > { %v2784_v51 = vpop.eup %2783  ;;  %v744_v55 = vadd.f32 1e-05, %v712_v7  ;;  %v839_v63 = vmul.f32 %v3683_v37, %v801_v30 }
 0x1d7   : > { %v745_v23 = vadd.f32 1e-05, %v713_v54  ;;  %v2786_v59 = vpop.eup %2785  ;;  %v682_v62 = vpop.xlane.xlu1 %681  ;;  %2584 = vmatmul.mubr.bf16.gmra.mrb[16].mxu0 %v897_v4  ;;  %v877_v44 = vadd.f32 %v3691_v53, %v838_v38  ;;  %v802_v8 = vmul.f32 %v2784_v51, %v3625_v48 }
 0x1d8   : > { %2795 = vrsqrt.f32 %v744_v55  ;;  %v714_v47 = vmul.f32 0.03125, %v682_v62  ;;  %v803_v43 = vmul.f32 %v2786_v59, %v3634_v12  ;;  %v878_v27 = vadd.f32 %v3691_v53, %v839_v63 }
 0x1d9   : > { %2797 = vrsqrt.f32 %v745_v23  ;;  %v898_v13 = vpack.c.bf16 %v877_v44, %v876_v34  ;;  %v840_v32 = vmul.f32 %v3683_v37, %v802_v8 }
 0x1da   : > { %v2788_v41 = vpop.eup %2787  ;;  %v746_v14 = vadd.f32 1e-05, %v714_v47  ;;  %v841_v9 = vmul.f32 %v3683_v37, %v803_v43 }
 0x1db   : > { %v2790_v58 = vpop.eup %2789  ;;  %2587 = vmatprep.mubr.bf16.mxu0 %v898_v13  ;;  %v879_v20 = vadd.f32 %v3691_v53, %v840_v32  ;;  %v804_v48 = vmul.f32 %v2788_v41, %v3637_v52 }
 0x1dc   : > { %2799 = vrsqrt.f32 %v746_v14  ;;  %v805_v21 = vmul.f32 %v2790_v58, %v3646_v16  ;;  %v880_v57 = vadd.f32 %v3691_v53, %v841_v9 }
 0x1dd   : > { %v899_v12 = vpack.c.bf16 %v879_v20, %v878_v27  ;;  %v842_v24 = vmul.f32 %v3683_v37, %v804_v48 }
 0x1de   : > { %v2792_v10 = vpop.eup %2791  ;;  %v843_v50 = vmul.f32 %v3683_v37, %v805_v21 }
 0x1df   : > { %v2794_v56 = vpop.eup %2793  ;;  %2588 = vmatmul.mubr.bf16.gmra.mrb[20].mxu0 %v899_v12  ;;  %v881_v29 = vadd.f32 %v3691_v53, %v842_v24  ;;  %v806_v25 = vmul.f32 %v2792_v10, %v3649_v17 }
 0x1e0   : > { %v807_v52 = vmul.f32 %v2794_v56, %v3658_v18  ;;  %v882_v3 = vadd.f32 %v3691_v53, %v843_v50  ;;  %v3808_v50 = vsel %vm1298_vm1, 1.0, %v3094_v2 }
 0x1e1   : > { %v900_v36 = vpack.c.bf16 %v881_v29, %v880_v57  ;;  %v844_v22 = vmul.f32 %v3683_v37, %v806_v25 }
 0x1e2   : > { %v2796_v16 = vpop.eup %2795  ;;  %v845_v33 = vmul.f32 %v3683_v37, %v807_v52 }
 0x1e3   : > { %v2798_v45 = vpop.eup %2797  ;;  %2591 = vmatprep.mubr.bf16.mxu0 %v900_v36  ;;  %v883_v11 = vadd.f32 %v3691_v53, %v844_v22  ;;  %v808_v31 = vmul.f32 %v2796_v16, %v3661_v19 }
 0x1e4   : > { %v809_v17 = vmul.f32 %v2798_v45, %v3670_v49  ;;  %v884_v39 = vadd.f32 %v3691_v53, %v845_v33 }
 0x1e5   : > { %v901_v35 = vpack.c.bf16 %v883_v11, %v882_v3  ;;  %v846_v15 = vmul.f32 %v3683_v37, %v808_v31 }
 0x1e6   : > { %v2800_v18 = vpop.eup %2799  ;;  %v847_v61 = vmul.f32 %v3683_v37, %v809_v17 }
 0x1e7   : > { %2592 = vmatmul.mubr.bf16.gmra.mrb[24].mxu0 %v901_v35  ;;  %v885_v42 = vadd.f32 %v3691_v53, %v846_v15  ;;  %v810_v60 = vmul.f32 %v2800_v18, %v3673_v6 }
 0x1e8   : > { %v886_v5 = vadd.f32 %v3691_v53, %v847_v61 }
 0x1e9   : > { %v902_v28 = vpack.c.bf16 %v885_v42, %v884_v39  ;;  %v848_v19 = vmul.f32 %v3683_v37, %v810_v60 }
 0x1eb   : > { %2595 = vmatprep.mubr.bf16.mxu0 %v902_v28  ;;  %v887_v49 = vadd.f32 %v3691_v53, %v848_v19 }
 0x1ed   : > { %v903_v40 = vpack.c.bf16 %v887_v49, %v886_v5 }
 0x1ef   : > { %2596 = vmatmul.mubr.bf16.gmra.mrb[28].mxu0 %v903_v40 }
 0x28a   : > { %v2569_v0 = vpop.f32.mrb[0].mxu0 }
 0x28b   : > { %v1018_v6 = vadd.f32 %v2569_v0, %v3789_v46  ;;  %v1009_v26 = vpop.f32.mrb[1].mxu0 }
 0x28c   : > { %v1010_v7 = vadd.f32 %v3789_v46, %v1009_v26  ;;  %v2570_v54 = vpop.f32.mrb[2].mxu0 }
 0x28d   : > { %v1170_v37 = vmul.f32 0.70710677, %v1018_v6  ;;  %v1021_v30 = vadd.f32 %v2570_v54, %v3789_v46  ;;  %v1012_v4 = vpop.f32.mrb[3].mxu0  ;;  %v1138_v56 = vmul.f32 0.5, %v1018_v6 }
 0x28e   : > { %v1168_v38 = vmul.f32 0.70710677, %v1010_v7  ;;  %v1013_v53 = vadd.f32 %v3789_v46, %v1012_v4  ;;  %v1136_v48 = vmul.f32 0.5, %v1010_v7 }
 0x28f   : > { %2801 = verf.f32 %v1170_v37  ;;  %v1171_v51 = vmul.f32 0.70710677, %v1021_v30  ;;  %v1139_v57 = vmul.f32 0.5, %v1021_v30 }
 0x290   : > { %2803 = verf.f32 %v1168_v38  ;;  %v1169_v55 = vmul.f32 0.70710677, %v1013_v53  ;;  %v1137_v45 = vmul.f32 0.5, %v1013_v53 }
 0x291   : > { %2805 = verf.f32 %v1171_v51 }
 0x292   : > { %2807 = verf.f32 %v1169_v55  ;;  %v2573_v23 = vpop.f32.mrb[4].mxu0 }
 0x293   : > { %v1034_v59 = vadd.f32 %v2573_v23, %v3789_v46  ;;  %v1025_v62 = vpop.f32.mrb[5].mxu0 }
 0x294   : > { %v1026_v34 = vadd.f32 %v3789_v46, %v1025_v62  ;;  %v2574_v44 = vpop.f32.mrb[6].mxu0 }
 0x295   : > { %v1174_v8 = vmul.f32 0.70710677, %v1034_v59  ;;  %v3798_v63 = vadd.f32 %v2574_v44, %v3789_v46  ;;  %v1028_v47 = vpop.f32.mrb[7].mxu0  ;;  %v1142_v7 = vmul.f32 0.5, %v1034_v59 }
 0x296   : > { %v1172_v43 = vmul.f32 0.70710677, %v1026_v34  ;;  %v1029_v13 = vadd.f32 %v3789_v46, %v1028_v47  ;;  %v1140_v60 = vmul.f32 0.5, %v1026_v34 }
 0x297   : > { %2809 = verf.f32 %v1174_v8  ;;  %v1175_v32 = vmul.f32 0.70710677, %v3798_v63 }
 0x298   : > { %2811 = verf.f32 %v1172_v43  ;;  %v1173_v41 = vmul.f32 0.70710677, %v1029_v13  ;;  %v1141_v54 = vmul.f32 0.5, %v1029_v13  ;;  %v1143_v43 = vmul.f32 0.5, %v3798_v63 }
 0x299   : > { %v2802_v14 = vpop.eup %2801  ;;  %2813 = verf.f32 %v1175_v32 }
 0x29a   : > { %v2804_v58 = vpop.eup %2803  ;;  %2815 = verf.f32 %v1173_v41  ;;  %v2577_v27 = vpop.f32.mrb[8].mxu0  ;;  %v1234_v24 = vadd.f32 1.0, %v2802_v14 }
 0x29b   : > { %v2806_v20 = vpop.eup %2805  ;;  %v3804_v9 = vadd.f32 %v2577_v27, %v3789_v46  ;;  %v1041_v21 = vpop.f32.mrb[9].mxu0  ;;  %v1232_v12 = vadd.f32 1.0, %v2804_v58 }
 0x29c   : > { %v2808_v10 = vpop.eup %2807  ;;  %v1042_v29 = vadd.f32 %v3789_v46, %v1041_v21  ;;  %v2578_v25 = vpop.f32.mrb[10].mxu0  ;;  %v1235_v16 = vadd.f32 1.0, %v2806_v20  ;;  %v3822_v17 = vmul.f32 %v1234_v24, %v1138_v56 }
 0x29d   : > { %v1178_v1 = vmul.f32 0.70710677, %v3804_v9  ;;  %v3812_v52 = vadd.f32 %v2578_v25, %v3789_v46  ;;  %v1044_v36 = vpop.f32.mrb[11].mxu0  ;;  %v3814_v22 = vmul.f32 %v1232_v12, %v1136_v48  ;;  %v1233_v31 = vadd.f32 1.0, %v2808_v10 }
 0x29e   : > { %v1176_v3 = vmul.f32 0.70710677, %v1042_v29  ;;  %v3817_v11 = vadd.f32 %v3789_v46, %v1044_v36  ;;  %v3827_v39 = vmul.f32 %v1235_v16, %v1139_v57  ;;  %v1303_v40 = vmul.f32 %v3808_v50, %v3822_v17 }
 0x29f   : > { %2817 = verf.f32 %v1178_v1  ;;  %v1179_v33 = vmul.f32 0.70710677, %v3812_v52  ;;  %v1301_v2 = vmul.f32 %v3808_v50, %v3814_v22  ;;  %v3825_v15 = vmul.f32 %v1233_v31, %v1137_v45 }
 0x2a0   : > { %2819 = verf.f32 %v1176_v3  ;;  %v1177_v35 = vmul.f32 0.70710677, %v3817_v11  ;;  %v1304_v51 = vmul.f32 %v3808_v50, %v3827_v39  ;;  %v1144_v58 = vmul.f32 0.5, %v1042_v29 }
 0x2a1   : > { %v2810_v18 = vpop.eup %2809  ;;  %2821 = verf.f32 %v1179_v33  ;;  %1333 = vadd.xlane.f32.xlu0 %v1301_v2  ;;  %v1302_v28 = vmul.f32 %v3808_v50, %v3825_v15  ;;  %v1146_v29 = vmul.f32 0.5, %v3804_v9  ;;  %v1147_v25 = vmul.f32 0.5, %v3812_v52 }
 0x2a2   : > { %v2812_v42 = vpop.eup %2811  ;;  %2823 = verf.f32 %v1177_v35  ;;  %v2581_v61 = vpop.f32.mrb[12].mxu0  ;;  %v1238_v6 = vadd.f32 1.0, %v2810_v18  ;;  %v1145_v1 = vmul.f32 0.5, %v3817_v11 }
 0x2a3   : > { %v2814_v19 = vpop.eup %2813  ;;  %v3832_v5 = vadd.f32 %v2581_v61, %v3789_v46  ;;  %v1057_v49 = vpop.f32.mrb[13].mxu0  ;;  %v1236_v0 = vadd.f32 1.0, %v2812_v42  ;;  %1335 = vadd.xlane.f32.xlu1 %v1302_v28 }
 0x2a4   : > { %v2816_v26 = vpop.eup %2815  ;;  %v3837_v37 = vadd.f32 %v3789_v46, %v1057_v49  ;;  %v2582_v30 = vpop.f32.mrb[14].mxu0  ;;  %v1239_v34 = vadd.f32 1.0, %v2814_v19  ;;  %v3854_v47 = vmul.f32 %v1238_v6, %v1142_v7 }
 0x2a5   : > { %v1182_v4 = vmul.f32 0.70710677, %v3832_v5  ;;  %v3841_v38 = vadd.f32 %v2582_v30, %v3789_v46  ;;  %1337 = vadd.xlane.f32.xlu0 %v1303_v40  ;;  %v1060_v53 = vpop.f32.mrb[15].mxu0  ;;  %v3845_v55 = vmul.f32 %v1236_v0, %v1140_v60  ;;  %v1237_v62 = vadd.f32 1.0, %v2816_v26 }
 0x2a6   : > { %v1180_v23 = vmul.f32 0.70710677, %v3837_v37  ;;  %v3849_v59 = vadd.f32 %v3789_v46, %v1060_v53  ;;  %v3862_v48 = vmul.f32 %v1239_v34, %v1143_v43  ;;  %v1307_v24 = vmul.f32 %v3808_v50, %v3854_v47 }
 0x2a7   : > { %2825 = verf.f32 %v1182_v4  ;;  %v1183_v44 = vmul.f32 0.70710677, %v3841_v38  ;;  %v1305_v8 = vmul.f32 %v3808_v50, %v3845_v55  ;;  %1339 = vadd.xlane.f32.xlu1 %v1304_v51  ;;  %v3858_v32 = vmul.f32 %v1237_v62, %v1141_v54 }
 0x2a8   : > { %2827 = verf.f32 %v1180_v23  ;;  %v1181_v13 = vmul.f32 0.70710677, %v3849_v59  ;;  %v1308_v11 = vmul.f32 %v3808_v50, %v3862_v48  ;;  %v1148_v0 = vmul.f32 0.5, %v3837_v37 }
 0x2a9   : > { %v2818_v41 = vpop.eup %2817  ;;  %2829 = verf.f32 %v1183_v44  ;;  %1341 = vadd.xlane.f32.xlu0 %v1305_v8  ;;  %v1306_v20 = vmul.f32 %v3808_v50, %v3858_v32  ;;  %v1150_v62 = vmul.f32 0.5, %v3832_v5  ;;  %v1149_v37 = vmul.f32 0.5, %v3849_v59 }
 0x2aa   : > { %v2820_v14 = vpop.eup %2819  ;;  %2831 = verf.f32 %v1181_v13  ;;  %v2585_v27 = vpop.f32.mrb[16].mxu0  ;;  %v1242_v56 = vadd.f32 1.0, %v2818_v41 }
 0x2ab   : > { %v2822_v21 = vpop.eup %2821  ;;  %v3865_v63 = vadd.f32 %v2585_v27, %v3789_v46  ;;  %v1073_v12 = vpop.f32.mrb[17].mxu0  ;;  %v1240_v10 = vadd.f32 1.0, %v2820_v14  ;;  %1343 = vadd.xlane.f32.xlu1 %v1306_v20 }
 0x2ac   : > { %v2824_v57 = vpop.eup %2823  ;;  %v3873_v36 = vadd.f32 %v3789_v46, %v1073_v12  ;;  %v2586_v16 = vpop.f32.mrb[18].mxu0  ;;  %v1243_v2 = vadd.f32 1.0, %v2822_v21  ;;  %v3890_v60 = vmul.f32 %v1242_v56, %v1146_v29 }
 0x2ad   : > { %v1186_v45 = vmul.f32 0.70710677, %v3865_v63  ;;  %v3877_v3 = vadd.f32 %v2586_v16, %v3789_v46  ;;  %1345 = vadd.xlane.f32.xlu0 %v1307_v24  ;;  %v1076_v31 = vpop.f32.mrb[19].mxu0  ;;  %v3879_v33 = vmul.f32 %v1240_v10, %v1144_v58  ;;  %v1241_v35 = vadd.f32 1.0, %v2824_v57 }
 0x2ae   : > { %v1184_v9 = vmul.f32 0.70710677, %v3873_v36  ;;  %v3883_v52 = vadd.f32 %v3789_v46, %v1076_v31  ;;  %v3895_v49 = vmul.f32 %v1243_v2, %v1147_v25  ;;  %v1311_v4 = vmul.f32 %v3808_v50, %v3890_v60 }
 0x2af   : > { %2833 = verf.f32 %v1186_v45  ;;  %v1187_v18 = vmul.f32 0.70710677, %v3877_v3  ;;  %v1309_v42 = vmul.f32 %v3808_v50, %v3879_v33  ;;  %1347 = vadd.xlane.f32.xlu1 %v1308_v11  ;;  %v3893_v28 = vmul.f32 %v1241_v35, %v1145_v1 }
 0x2b0   : > { %2835 = verf.f32 %v1184_v9  ;;  %v1185_v61 = vmul.f32 0.70710677, %v3883_v52  ;;  %v1312_v41 = vmul.f32 %v3808_v50, %v3895_v49  ;;  %v1151_v24 = vmul.f32 0.5, %v3841_v38 }
 0x2b1   : > { %v2826_v19 = vpop.eup %2825  ;;  %2837 = verf.f32 %v1187_v18  ;;  %1349 = vadd.xlane.f32.xlu0 %v1309_v42  ;;  %v1310_v26 = vmul.f32 %v3808_v50, %v3893_v28  ;;  %v1152_v25 = vmul.f32 0.5, %v3873_v36  ;;  %v1154_v36 = vmul.f32 0.5, %v3865_v63 }
 0x2b2   : > { %v2828_v40 = vpop.eup %2827  ;;  %2839 = verf.f32 %v1185_v61  ;;  %v2589_v6 = vpop.f32.mrb[20].mxu0  ;;  %v1246_v51 = vadd.f32 1.0, %v2826_v19  ;;  %v1155_v42 = vmul.f32 0.5, %v3877_v3  ;;  %v1153_v61 = vmul.f32 0.5, %v3883_v52 }
 0x2b3   : > { %v2830_v7 = vpop.eup %2829  ;;  %v3901_v54 = vadd.f32 %v2589_v6, %v3789_v46  ;;  %v1089_v30 = vpop.f32.mrb[21].mxu0  ;;  %v1244_v53 = vadd.f32 1.0, %v2828_v40  ;;  %1351 = vadd.xlane.f32.xlu1 %v1310_v26 }
 0x2b4   : > { %v2832_v23 = vpop.eup %2831  ;;  %v3908_v34 = vadd.f32 %v3789_v46, %v1089_v30  ;;  %v2590_v44 = vpop.f32.mrb[22].mxu0  ;;  %v1247_v27 = vadd.f32 1.0, %v2830_v7  ;;  %v3925_v12 = vmul.f32 %v1246_v51, %v1150_v62 }
 0x2b5   : > { %v1190_v8 = vmul.f32 0.70710677, %v3901_v54  ;;  %v3912_v43 = vadd.f32 %v2590_v44, %v3789_v46  ;;  %1353 = vadd.xlane.f32.xlu0 %v1311_v4  ;;  %v1092_v13 = vpop.f32.mrb[23].mxu0  ;;  %v3916_v14 = vmul.f32 %v1244_v53, %v1148_v0  ;;  %v1245_v58 = vadd.f32 1.0, %v2832_v23 }
 0x2b6   : > { %v1188_v5 = vmul.f32 0.70710677, %v3908_v34  ;;  %v3920_v59 = vadd.f32 %v3789_v46, %v1092_v13  ;;  %v3934_v45 = vmul.f32 %v1247_v27, %v1151_v24  ;;  %v1315_v9 = vmul.f32 %v3808_v50, %v3925_v12 }
 0x2b7   : > { %2841 = verf.f32 %v1190_v8  ;;  %v1191_v20 = vmul.f32 0.70710677, %v3912_v43  ;;  %v1313_v21 = vmul.f32 %v3808_v50, %v3916_v14  ;;  %1355 = vadd.xlane.f32.xlu1 %v1312_v41  ;;  %v3929_v56 = vmul.f32 %v1245_v58, %v1149_v37 }
 0x2b8   : > { %2843 = verf.f32 %v1188_v5  ;;  %v1189_v10 = vmul.f32 0.70710677, %v3920_v59  ;;  %v1316_v52 = vmul.f32 %v3808_v50, %v3934_v45  ;;  %v1156_v41 = vmul.f32 0.5, %v3908_v34 }
 0x2b9   : > { %v2834_v57 = vpop.eup %2833  ;;  %2845 = verf.f32 %v1191_v20  ;;  %1357 = vadd.xlane.f32.xlu0 %v1313_v21  ;;  %v1314_v16 = vmul.f32 %v3808_v50, %v3929_v56  ;;  %v1157_v34 = vmul.f32 0.5, %v3920_v59 }
 0x2ba   : > { %v2836_v29 = vpop.eup %2835  ;;  %2847 = verf.f32 %v1189_v10  ;;  %v2593_v1 = vpop.f32.mrb[24].mxu0  ;;  %v1250_v35 = vadd.f32 1.0, %v2834_v57 }
 0x2bb   : > { %v2838_v38 = vpop.eup %2837  ;;  %v3937_v31 = vadd.f32 %v2593_v1, %v3789_v46  ;;  %v1105_v2 = vpop.f32.mrb[25].mxu0  ;;  %v1248_v11 = vadd.f32 1.0, %v2836_v29  ;;  %1359 = vadd.xlane.f32.xlu1 %v1314_v16 }
 0x2bc   : > { %v2840_v18 = vpop.eup %2839  ;;  %v3945_v19 = vadd.f32 %v3789_v46, %v1105_v2  ;;  %v2594_v40 = vpop.f32.mrb[26].mxu0  ;;  %v1251_v30 = vadd.f32 1.0, %v2838_v38  ;;  %v3962_v23 = vmul.f32 %v1250_v35, %v1154_v36 }
 0x2bd   : > { %v1194_v0 = vmul.f32 0.70710677, %v3937_v31  ;;  %v3949_v6 = vadd.f32 %v2594_v40, %v3789_v46  ;;  %1361 = vadd.xlane.f32.xlu0 %v1315_v9  ;;  %v1108_v26 = vpop.f32.mrb[27].mxu0  ;;  %v3951_v7 = vmul.f32 %v1248_v11, %v1152_v25  ;;  %v1249_v4 = vadd.f32 1.0, %v2840_v18 }
 0x2be   : > { %v1192_v63 = vmul.f32 0.70710677, %v3945_v19  ;;  %v3955_v3 = vadd.f32 %v3789_v46, %v1108_v26  ;;  %v3967_v8 = vmul.f32 %v1251_v30, %v1155_v42  ;;  %v1319_v24 = vmul.f32 %v3808_v50, %v3962_v23 }
 0x2bf   : > { %2849 = verf.f32 %v1194_v0  ;;  %v1195_v53 = vmul.f32 0.70710677, %v3949_v6  ;;  %v1317_v51 = vmul.f32 %v3808_v50, %v3951_v7  ;;  %1363 = vadd.xlane.f32.xlu1 %v1316_v52  ;;  %v3965_v37 = vmul.f32 %v1249_v4, %v1153_v61 }
 0x2c0   : > { %2851 = verf.f32 %v1192_v63  ;;  %v1193_v62 = vmul.f32 0.70710677, %v3955_v3  ;;  %v1158_v25 = vmul.f32 0.5, %v3901_v54  ;;  %v1320_v11 = vmul.f32 %v3808_v50, %v3967_v8 }
 0x2c1   : > { %v2842_v44 = vpop.eup %2841  ;;  %2853 = verf.f32 %v1195_v53  ;;  %1365 = vadd.xlane.f32.xlu0 %v1317_v51  ;;  %v1318_v58 = vmul.f32 %v3808_v50, %v3965_v37  ;;  %v1159_v0 = vmul.f32 0.5, %v3912_v43  ;;  %v1160_v51 = vmul.f32 0.5, %v3945_v19 }
 0x2c2   : > { %v2844_v13 = vpop.eup %2843  ;;  %2855 = verf.f32 %v1193_v62  ;;  %v2597_v5 = vpop.f32.mrb[28].mxu0  ;;  %v1254_v57 = vadd.f32 1.0, %v2842_v44 }
 0x2c3   : > { %v2846_v27 = vpop.eup %2845  ;;  %v3973_v20 = vadd.f32 %v2597_v5, %v3789_v46  ;;  %v1121_v21 = vpop.f32.mrb[29].mxu0  ;;  %v1252_v10 = vadd.f32 1.0, %v2844_v13  ;;  %1367 = vadd.xlane.f32.xlu1 %v1318_v58  ;;  %v1161_v5 = vmul.f32 0.5, %v3955_v3 }
 0x2c4   : > { %v2848_v29 = vpop.eup %2847  ;;  %v1122_v1 = vadd.f32 %v3789_v46, %v1121_v21  ;;  %v2598_v16 = vpop.f32.mrb[30].mxu0  ;;  %v1255_v36 = vadd.f32 1.0, %v2846_v27  ;;  %v3992_v40 = vmul.f32 %v1254_v57, %v1158_v25 }
 0x2c5   : > { %v1198_v38 = vmul.f32 0.70710677, %v3973_v20  ;;  %v3982_v2 = vadd.f32 %v2598_v16, %v3789_v46  ;;  %1369 = vadd.xlane.f32.xlu0 %v1319_v24  ;;  %v1124_v9 = vpop.f32.mrb[31].mxu0  ;;  %v3986_v35 = vmul.f32 %v1252_v10, %v1156_v41  ;;  %v1253_v59 = vadd.f32 1.0, %v2848_v29 }
 0x2c6   : > { %v1196_v18 = vmul.f32 0.70710677, %v1122_v1  ;;  %v1125_v54 = vadd.f32 %v3789_v46, %v1124_v9  ;;  %v3999_v4 = vmul.f32 %v1255_v36, %v1159_v0  ;;  %v1323_v43 = vmul.f32 %v3808_v50, %v3992_v40 }
 0x2c7   : > { %2857 = verf.f32 %v1198_v38  ;;  %v1199_v42 = vmul.f32 0.70710677, %v3982_v2  ;;  %v1321_v61 = vmul.f32 %v3808_v50, %v3986_v35  ;;  %1371 = vadd.xlane.f32.xlu1 %v1320_v11  ;;  %v3995_v30 = vmul.f32 %v1253_v59, %v1157_v34 }
 0x2c8   : > { %2859 = verf.f32 %v1196_v18  ;;  %v1197_v26 = vmul.f32 0.70710677, %v1125_v54  ;;  %v1162_v41 = vmul.f32 0.5, %v3937_v31  ;;  %v1324_v21 = vmul.f32 %v3808_v50, %v3999_v4 }
 0x2c9   : > { %v2850_v63 = vpop.eup %2849  ;;  %2861 = verf.f32 %v1199_v42  ;;  %1373 = vadd.xlane.f32.xlu0 %v1321_v61  ;;  %v1322_v52 = vmul.f32 %v3808_v50, %v3995_v30  ;;  %v1163_v29 = vmul.f32 0.5, %v3949_v6  ;;  %v1164_v38 = vmul.f32 0.5, %v1122_v1 }
 0x2ca   : > { %v2852_v46 = vpop.eup %2851  ;;  %2863 = verf.f32 %v1197_v26  ;;  %v1258_v44 = vadd.f32 1.0, %v2850_v63  ;;  %v1166_v6 = vmul.f32 0.5, %v3973_v20  ;;  %v1165_v36 = vmul.f32 0.5, %v1125_v54 }
 0x2cb   : > { %v2854_v53 = vpop.eup %2853  ;;  %v1256_v62 = vadd.f32 1.0, %v2852_v46  ;;  %1375 = vadd.xlane.f32.xlu1 %v1322_v52  ;;  %v1167_v52 = vmul.f32 0.5, %v3982_v2 }
 0x2cc   : > { %v2856_v13 = vpop.eup %2855  ;;  %v1259_v24 = vadd.f32 1.0, %v2854_v53  ;;  %v4014_v57 = vmul.f32 %v1258_v44, %v1162_v41 }
 0x2cd   : > { %1377 = vadd.xlane.f32.xlu0 %v1323_v43  ;;  %v4006_v58 = vmul.f32 %v1256_v62, %v1160_v51  ;;  %v1257_v27 = vadd.f32 1.0, %v2856_v13  ;;  %v2729_v43 = vld [vmem:[#allocation7] sm:$0xff]  }
 0x2ce   : > { %v4019_v34 = vmul.f32 %v1259_v24, %v1163_v29  ;;  %v1327_v9 = vmul.f32 %v3808_v50, %v4014_v57  ;;  %2599 = vmatprep.subr.bf16.mxu1 %v2729_v43 }
 0x2cf   : > { %v1325_v19 = vmul.f32 %v3808_v50, %v4006_v58  ;;  %v4012_v10 = vmul.f32 %v1257_v27, %v1161_v5  ;;  %1379 = vadd.xlane.f32.xlu1 %v1324_v21  ;;  %2600 = vmatpush3.bf16.msra.mxu1 %v2729_v43 }
 0x2d0   : > { %v1328_v0 = vmul.f32 %v3808_v50, %v4019_v34 }
 0x2d1   : > { %v2858_v31 = vpop.eup %2857  ;;  %1381 = vadd.xlane.f32.xlu0 %v1325_v19  ;;  %v1326_v3 = vmul.f32 %v3808_v50, %v4012_v10 }
 0x2d2   : > { %v2860_v25 = vpop.eup %2859  ;;  %v1262_v18 = vadd.f32 1.0, %v2858_v31 }
 0x2d3   : > { %v2862_v16 = vpop.eup %2861  ;;  %v1260_v11 = vadd.f32 1.0, %v2860_v25  ;;  %1383 = vadd.xlane.f32.xlu1 %v1326_v3 }
 0x2d4   : > { %v2864_v59 = vpop.eup %2863  ;;  %v1263_v26 = vadd.f32 1.0, %v2862_v16  ;;  %v4032_v46 = vmul.f32 %v1262_v18, %v1166_v6 }
 0x2d5   : > { %1385 = vadd.xlane.f32.xlu0 %v1327_v9  ;;  %v4024_v42 = vmul.f32 %v1260_v11, %v1164_v38  ;;  %v1261_v61 = vadd.f32 1.0, %v2864_v59 }
 0x2d6   : > { %v4037_v54 = vmul.f32 %v1263_v26, %v1167_v52  ;;  %v1331_v53 = vmul.f32 %v3808_v50, %v4032_v46 }
 0x2d7   : > { %v1329_v1 = vmul.f32 %v3808_v50, %v4024_v42  ;;  %v4030_v63 = vmul.f32 %v1261_v61, %v1165_v36  ;;  %1387 = vadd.xlane.f32.xlu1 %v1328_v0 }
 0x2d8   : > { %v1332_v51 = vmul.f32 %v3808_v50, %v4037_v54 }
 0x2d9   : > { %1389 = vadd.xlane.f32.xlu0 %v1329_v1  ;;  %v1330_v20 = vmul.f32 %v3808_v50, %v4030_v63 }
 0x2db   : > { %1391 = vadd.xlane.f32.xlu1 %v1330_v20 }
 0x2dd   : > { %1393 = vadd.xlane.f32.xlu0 %v1331_v53 }
 0x2df   : > { %1395 = vadd.xlane.f32.xlu1 %v1332_v51 }
 0x32e   : > { %v1334_v2 = vpop.xlane.xlu0 %1333 }
 0x32f   : > { %v1397_v62 = vmul.f32 0.015625, %v1334_v2 }
 0x330   : > { %v1336_v13 = vpop.xlane.xlu1 %1335 }
 0x331   : > { %v1429_v44 = vsub.f32 %v3814_v22, %v1397_v62  ;;  %v1398_v41 = vmul.f32 0.015625, %v1336_v13 }
 0x332   : > { %v1338_v5 = vpop.xlane.xlu0 %1337 }
 0x333   : > { %v1399_v27 = vmul.f32 0.015625, %v1338_v5  ;;  %v4045_v21 = vmul.f32 %v3808_v50, %v1429_v44  ;;  %v1430_v24 = vsub.f32 %v3825_v15, %v1398_v41 }
 0x334   : > { %v1340_v29 = vpop.xlane.xlu1 %1339 }
 0x335   : > { %v1431_v19 = vsub.f32 %v3822_v17, %v1399_v27  ;;  %v1493_v31 = vmul.f32 %v4045_v21, %v4045_v21  ;;  %v1400_v3 = vmul.f32 0.015625, %v1340_v29  ;;  %v4052_v16 = vmul.f32 %v3808_v50, %v1430_v24 }
 0x336   : > { %v1342_v25 = vpop.xlane.xlu0 %1341 }
 0x337   : > { %v4055_v22 = vmul.f32 %v3808_v50, %v1431_v19  ;;  %v1401_v38 = vmul.f32 0.015625, %v1342_v25  ;;  %1525 = vadd.xlane.f32.xlu0 %v1493_v31  ;;  %v1432_v9 = vsub.f32 %v3827_v39, %v1400_v3  ;;  %v1494_v15 = vmul.f32 %v4052_v16, %v4052_v16 }
 0x338   : > { %v1344_v11 = vpop.xlane.xlu1 %1343 }
 0x339   : > { %v1433_v17 = vsub.f32 %v3845_v55, %v1401_v38  ;;  %v1495_v18 = vmul.f32 %v4055_v22, %v4055_v22  ;;  %v4064_v59 = vmul.f32 %v3808_v50, %v1432_v9  ;;  %v1402_v6 = vmul.f32 0.015625, %v1344_v11  ;;  %1527 = vadd.xlane.f32.xlu1 %v1494_v15 }
 0x33a   : > { %v1346_v36 = vpop.xlane.xlu0 %1345 }
 0x33b   : > { %v4067_v61 = vmul.f32 %v3808_v50, %v1433_v17  ;;  %v1403_v0 = vmul.f32 0.015625, %v1346_v36  ;;  %1529 = vadd.xlane.f32.xlu0 %v1495_v18  ;;  %v1434_v39 = vsub.f32 %v3858_v32, %v1402_v6  ;;  %v1496_v55 = vmul.f32 %v4064_v59, %v4064_v59 }
 0x33c   : > { %v1348_v1 = vpop.xlane.xlu1 %1347 }
 0x33d   : > { %v1435_v26 = vsub.f32 %v3854_v47, %v1403_v0  ;;  %v1497_v52 = vmul.f32 %v4067_v61, %v4067_v61  ;;  %v4076_v20 = vmul.f32 %v3808_v50, %v1434_v39  ;;  %v1404_v53 = vmul.f32 0.015625, %v1348_v1  ;;  %1531 = vadd.xlane.f32.xlu1 %v1496_v55  ;;  %v2731_v1 = vld [vmem:[#allocation7 + $0x10] sm:$0xff]  }
 0x33e   : > { %v1350_v51 = vpop.xlane.xlu0 %1349 }
 0x33f   : > { %v4079_v43 = vmul.f32 %v3808_v50, %v1435_v26  ;;  %v1405_v2 = vmul.f32 0.015625, %v1350_v51  ;;  %1533 = vadd.xlane.f32.xlu0 %v1497_v52  ;;  %v1436_v32 = vsub.f32 %v3862_v48, %v1404_v53  ;;  %v1498_v47 = vmul.f32 %v4076_v20, %v4076_v20 }
 0x340   : > { %v1352_v44 = vpop.xlane.xlu1 %1351 }
 0x341   : > { %v1437_v62 = vsub.f32 %v3879_v33, %v1405_v2  ;;  %v1499_v13 = vmul.f32 %v4079_v43, %v4079_v43  ;;  %v4088_v41 = vmul.f32 %v3808_v50, %v1436_v32  ;;  %v1406_v5 = vmul.f32 0.015625, %v1352_v44  ;;  %1535 = vadd.xlane.f32.xlu1 %v1498_v47 }
 0x342   : > { %v1354_v27 = vpop.xlane.xlu0 %1353 }
 0x343   : > { %v4091_v24 = vmul.f32 %v3808_v50, %v1437_v62  ;;  %v1407_v19 = vmul.f32 0.015625, %v1354_v27  ;;  %1537 = vadd.xlane.f32.xlu0 %v1499_v13  ;;  %v1438_v48 = vsub.f32 %v3893_v28, %v1406_v5  ;;  %v1500_v33 = vmul.f32 %v4088_v41, %v4088_v41  ;;  %v2730_v28 = vld [vmem:[#allocation7 + $0x8] sm:$0xff]   ;;  %v2732_v13 = vld [vmem:[#allocation7 + $0x18] sm:$0xff]  }
 0x344   : > { %v1356_v31 = vpop.xlane.xlu1 %1355  ;;  %2601 = vmatprep.subr.bf16.mxu1 %v2730_v28 }
 0x345   : > { %v1439_v29 = vsub.f32 %v3890_v60, %v1407_v19  ;;  %v1501_v3 = vmul.f32 %v4091_v24, %v4091_v24  ;;  %v4100_v25 = vmul.f32 %v3808_v50, %v1438_v48  ;;  %v1408_v38 = vmul.f32 0.015625, %v1356_v31  ;;  %1539 = vadd.xlane.f32.xlu1 %v1500_v33  ;;  %2602 = vmatpush3.bf16.msra.mxu1 %v2730_v28 }
 0x346   : > { %v1358_v9 = vpop.xlane.xlu0 %1357  ;;  %2603 = vmatprep.subr.bf16.mxu1 %v2731_v1 }
 0x347   : > { %v4103_v15 = vmul.f32 %v3808_v50, %v1439_v29  ;;  %v1409_v17 = vmul.f32 0.015625, %v1358_v9  ;;  %1541 = vadd.xlane.f32.xlu0 %v1501_v3  ;;  %v1440_v11 = vsub.f32 %v3895_v49, %v1408_v38  ;;  %v1502_v60 = vmul.f32 %v4100_v25, %v4100_v25  ;;  %v2733_v38 = vld [vmem:[#allocation7 + $0x20] sm:$0xff]  }
 0x348   : > { %v1360_v6 = vpop.xlane.xlu1 %1359 }
 0x349   : > { %v1441_v18 = vsub.f32 %v3916_v14, %v1409_v17  ;;  %v1503_v36 = vmul.f32 %v4103_v15, %v4103_v15  ;;  %v4112_v0 = vmul.f32 %v3808_v50, %v1440_v11  ;;  %v1410_v39 = vmul.f32 0.015625, %v1360_v6  ;;  %1543 = vadd.xlane.f32.xlu1 %v1502_v60  ;;  %2604 = vmatpush3.bf16.msra.mxu1 %v2731_v1 }
 0x34a   : > { %v1362_v55 = vpop.xlane.xlu0 %1361  ;;  %2605 = vmatprep.subr.bf16.mxu1 %v2732_v13 }
 0x34b   : > { %v4115_v26 = vmul.f32 %v3808_v50, %v1441_v18  ;;  %v1411_v49 = vmul.f32 0.015625, %v1362_v55  ;;  %1545 = vadd.xlane.f32.xlu0 %v1503_v36  ;;  %v1442_v14 = vsub.f32 %v3929_v56, %v1410_v39  ;;  %v1504_v52 = vmul.f32 %v4112_v0, %v4112_v0  ;;  %v2734_v39 = vld [vmem:[#allocation7 + $0x28] sm:$0xff]  }
 0x34c   : > { %v1364_v51 = vpop.xlane.xlu1 %1363 }
 0x34d   : > { %v1443_v53 = vsub.f32 %v3925_v12, %v1411_v49  ;;  %v1505_v2 = vmul.f32 %v4115_v26, %v4115_v26  ;;  %v4124_v32 = vmul.f32 %v3808_v50, %v1442_v14  ;;  %v1412_v47 = vmul.f32 0.015625, %v1364_v51  ;;  %1547 = vadd.xlane.f32.xlu1 %v1504_v52  ;;  %2606 = vmatpush3.bf16.msra.mxu1 %v2732_v13 }
 0x34e   : > { %v1366_v62 = vpop.xlane.xlu0 %1365  ;;  %2607 = vmatprep.subr.bf16.mxu1 %v2733_v38 }
 0x34f   : > { %v4127_v44 = vmul.f32 %v3808_v50, %v1443_v53  ;;  %v1413_v56 = vmul.f32 0.015625, %v1366_v62  ;;  %1549 = vadd.xlane.f32.xlu0 %v1505_v2  ;;  %v1444_v12 = vsub.f32 %v3934_v45, %v1412_v47  ;;  %v1506_v5 = vmul.f32 %v4124_v32, %v4124_v32  ;;  %v2735_v47 = vld [vmem:[#allocation7 + $0x30] sm:$0xff]  }
 0x350   : > { %v1368_v19 = vpop.xlane.xlu1 %1367 }
 0x351   : > { %v1445_v27 = vsub.f32 %v3951_v7, %v1413_v56  ;;  %v1507_v48 = vmul.f32 %v4127_v44, %v4127_v44  ;;  %v4136_v33 = vmul.f32 %v3808_v50, %v1444_v12  ;;  %v1414_v29 = vmul.f32 0.015625, %v1368_v19  ;;  %1551 = vadd.xlane.f32.xlu1 %v1506_v5  ;;  %2608 = vmatpush3.bf16.msra.mxu1 %v2733_v38 }
 0x352   : > { %v1370_v31 = vpop.xlane.xlu0 %1369  ;;  %2609 = vmatprep.subr.bf16.mxu1 %v2734_v39 }
 0x353   : > { %v4139_v3 = vmul.f32 %v3808_v50, %v1445_v27  ;;  %v1415_v45 = vmul.f32 0.015625, %v1370_v31  ;;  %1553 = vadd.xlane.f32.xlu0 %v1507_v48  ;;  %v1446_v7 = vsub.f32 %v3965_v37, %v1414_v29  ;;  %v1508_v9 = vmul.f32 %v4136_v33, %v4136_v33  ;;  %v2736_v29 = vld [vmem:[#allocation7 + $0x38] sm:$0xff]  }
 0x354   : > { %v1372_v28 = vpop.xlane.xlu1 %1371 }
 0x355   : > { %v1447_v17 = vsub.f32 %v3962_v23, %v1415_v45  ;;  %v1509_v11 = vmul.f32 %v4139_v3, %v4139_v3  ;;  %v4148_v60 = vmul.f32 %v3808_v50, %v1446_v7  ;;  %v1416_v18 = vmul.f32 0.015625, %v1372_v28  ;;  %1555 = vadd.xlane.f32.xlu1 %v1508_v9  ;;  %2610 = vmatpush3.bf16.msra.mxu1 %v2734_v39 }
 0x356   : > { %v1374_v6 = vpop.xlane.xlu0 %1373  ;;  %2611 = vmatprep.subr.bf16.mxu1 %v2735_v47 }
 0x357   : > { %v4151_v36 = vmul.f32 %v3808_v50, %v1447_v17  ;;  %v1417_v37 = vmul.f32 0.015625, %v1374_v6  ;;  %1557 = vadd.xlane.f32.xlu0 %v1509_v11  ;;  %v1448_v23 = vsub.f32 %v3967_v8, %v1416_v18  ;;  %v1510_v55 = vmul.f32 %v4148_v60, %v4148_v60 }
 0x358   : > { %v1376_v1 = vpop.xlane.xlu1 %1375 }
 0x359   : > { %v1449_v49 = vsub.f32 %v3986_v35, %v1417_v37  ;;  %v1511_v14 = vmul.f32 %v4151_v36, %v4151_v36  ;;  %v4160_v52 = vmul.f32 %v3808_v50, %v1448_v23  ;;  %v1418_v53 = vmul.f32 0.015625, %v1376_v1  ;;  %1559 = vadd.xlane.f32.xlu1 %v1510_v55  ;;  %2612 = vmatpush3.bf16.msra.mxu1 %v2735_v47 }
 0x35a   : > { %v1378_v51 = vpop.xlane.xlu0 %1377  ;;  %2613 = vmatprep.subr.bf16.mxu1 %v2736_v29 }
 0x35b   : > { %v4163_v2 = vmul.f32 %v3808_v50, %v1449_v49  ;;  %v1419_v8 = vmul.f32 0.015625, %v1378_v51  ;;  %1561 = vadd.xlane.f32.xlu0 %v1511_v14  ;;  %v1450_v35 = vsub.f32 %v3995_v30, %v1418_v53  ;;  %v1512_v62 = vmul.f32 %v4160_v52, %v4160_v52 }
 0x35c   : > { %v1380_v13 = vpop.xlane.xlu1 %1379 }
 0x35d   : > { %v1451_v56 = vsub.f32 %v3992_v40, %v1419_v8  ;;  %v1513_v12 = vmul.f32 %v4163_v2, %v4163_v2  ;;  %v4172_v5 = vmul.f32 %v3808_v50, %v1450_v35  ;;  %v1420_v27 = vmul.f32 0.015625, %v1380_v13  ;;  %1563 = vadd.xlane.f32.xlu1 %v1512_v62  ;;  %2614 = vmatpush3.bf16.msra.mxu1 %v2736_v29 }
 0x35e   : > { %v1382_v19 = vpop.xlane.xlu0 %1381 }
 0x35f   : > { %v4175_v48 = vmul.f32 %v3808_v50, %v1451_v56  ;;  %v1421_v30 = vmul.f32 0.015625, %v1382_v19  ;;  %1565 = vadd.xlane.f32.xlu0 %v1513_v12  ;;  %v1452_v40 = vsub.f32 %v3999_v4, %v1420_v27  ;;  %v1514_v31 = vmul.f32 %v4172_v5, %v4172_v5 }
 0x360   : > { %v1384_v38 = vpop.xlane.xlu1 %1383 }
 0x361   : > { %v1453_v45 = vsub.f32 %v4006_v58, %v1421_v30  ;;  %v1515_v7 = vmul.f32 %v4175_v48, %v4175_v48  ;;  %v4184_v9 = vmul.f32 %v3808_v50, %v1452_v40  ;;  %v1422_v17 = vmul.f32 0.015625, %v1384_v38  ;;  %1567 = vadd.xlane.f32.xlu1 %v1514_v31 }
 0x362   : > { %v1386_v28 = vpop.xlane.xlu0 %1385 }
 0x363   : > { %v4187_v11 = vmul.f32 %v3808_v50, %v1453_v45  ;;  %v1423_v4 = vmul.f32 0.015625, %v1386_v28  ;;  %1569 = vadd.xlane.f32.xlu0 %v1515_v7  ;;  %v1454_v18 = vsub.f32 %v4012_v10, %v1422_v17  ;;  %v1516_v58 = vmul.f32 %v4184_v9, %v4184_v9 }
 0x364   : > { %v1388_v37 = vpop.xlane.xlu1 %1387 }
 0x365   : > { %v1455_v6 = vsub.f32 %v4014_v57, %v1423_v4  ;;  %v1517_v39 = vmul.f32 %v4187_v11, %v4187_v11  ;;  %v4196_v23 = vmul.f32 %v3808_v50, %v1454_v18  ;;  %v1424_v55 = vmul.f32 0.015625, %v1388_v37  ;;  %1571 = vadd.xlane.f32.xlu1 %v1516_v58 }
 0x366   : > { %v1390_v49 = vpop.xlane.xlu0 %1389 }
 0x367   : > { %v4199_v1 = vmul.f32 %v3808_v50, %v1455_v6  ;;  %v1425_v14 = vmul.f32 0.015625, %v1390_v49  ;;  %1573 = vadd.xlane.f32.xlu0 %v1517_v39  ;;  %v1456_v10 = vsub.f32 %v4019_v34, %v1424_v55  ;;  %v1518_v57 = vmul.f32 %v4196_v23, %v4196_v23 }
 0x368   : > { %v1392_v51 = vpop.xlane.xlu1 %1391 }
 0x369   : > { %v1457_v53 = vsub.f32 %v4024_v42, %v1425_v14  ;;  %v1519_v8 = vmul.f32 %v4199_v1, %v4199_v1  ;;  %v4208_v47 = vmul.f32 %v3808_v50, %v1456_v10  ;;  %v1426_v35 = vmul.f32 0.015625, %v1392_v51  ;;  %1575 = vadd.xlane.f32.xlu1 %v1518_v57 }
 0x36a   : > { %v1394_v62 = vpop.xlane.xlu0 %1393 }
 0x36b   : > { %v4211_v56 = vmul.f32 %v3808_v50, %v1457_v53  ;;  %v1427_v13 = vmul.f32 0.015625, %v1394_v62  ;;  %1577 = vadd.xlane.f32.xlu0 %v1519_v8  ;;  %v1458_v34 = vsub.f32 %v4030_v63, %v1426_v35  ;;  %v1520_v42 = vmul.f32 %v4208_v47, %v4208_v47 }
 0x36c   : > { %v1396_v27 = vpop.xlane.xlu1 %1395 }
 0x36d   : > { %v1459_v12 = vsub.f32 %v4032_v46, %v1427_v13  ;;  %v1521_v19 = vmul.f32 %v4211_v56, %v4211_v56  ;;  %v4220_v30 = vmul.f32 %v3808_v50, %v1458_v34  ;;  %v1428_v29 = vmul.f32 0.015625, %v1396_v27  ;;  %1579 = vadd.xlane.f32.xlu1 %v1520_v42  ;;  %v2328_v27 = vld [vmem:[%s4417_s6] ss:$0 sm:$0xff] }
 0x36f   : > { %v4223_v40 = vmul.f32 %v3808_v50, %v1459_v12  ;;  %1581 = vadd.xlane.f32.xlu0 %v1521_v19  ;;  %v1460_v63 = vsub.f32 %v4037_v54, %v1428_v29  ;;  %v1522_v31 = vmul.f32 %v4220_v30, %v4220_v30  ;;  %v4238_v12 = vld [vmem:[%s4416_s5] ss:$0 sm:$0xff] }
 0x371   : > { %v1523_v46 = vmul.f32 %v4223_v40, %v4223_v40  ;;  %v4231_v45 = vmul.f32 %v3808_v50, %v1460_v63  ;;  %1583 = vadd.xlane.f32.xlu1 %v1522_v31 }
 0x373   : > { %1585 = vadd.xlane.f32.xlu0 %v1523_v46  ;;  %v1524_v38 = vmul.f32 %v4231_v45, %v4231_v45 }
 0x375   : > { %1587 = vadd.xlane.f32.xlu1 %v1524_v38 }
 0x3c4   : > { %v1526_v7 = vpop.xlane.xlu0 %1525 }
 0x3c5   : > { %v1589_v17 = vmul.f32 0.015625, %v1526_v7 }
 0x3c6   : > { %v1528_v4 = vpop.xlane.xlu1 %1527 }
 0x3c7   : > { %v1621_v28 = vadd.f32 1e-05, %v1589_v17  ;;  %v1590_v54 = vmul.f32 0.015625, %v1528_v4  ;;  %v4246_v17 = vmul.f32 %v2328_v27, %v3808_v50 }
 0x3c8   : > { %v1530_v18 = vpop.xlane.xlu0 %1529 }
 0x3c9   : > { %2865 = vrsqrt.f32 %v1621_v28  ;;  %v1591_v58 = vmul.f32 0.015625, %v1530_v18  ;;  %v1622_v6 = vadd.f32 1e-05, %v1590_v54 }
 0x3ca   : > { %v1532_v39 = vpop.xlane.xlu1 %1531 }
 0x3cb   : > { %v1623_v37 = vadd.f32 1e-05, %v1591_v58  ;;  %2867 = vrsqrt.f32 %v1622_v6  ;;  %v1592_v55 = vmul.f32 0.015625, %v1532_v39 }
 0x3cc   : > { %v1534_v49 = vpop.xlane.xlu0 %1533 }
 0x3cd   : > { %2869 = vrsqrt.f32 %v1623_v37  ;;  %v1593_v14 = vmul.f32 0.015625, %v1534_v49  ;;  %v1624_v10 = vadd.f32 1e-05, %v1592_v55 }
 0x3ce   : > { %v1536_v53 = vpop.xlane.xlu1 %1535 }
 0x3cf   : > { %v1625_v57 = vadd.f32 1e-05, %v1593_v14  ;;  %2871 = vrsqrt.f32 %v1624_v10  ;;  %v1594_v51 = vmul.f32 0.015625, %v1536_v53 }
 0x3d0   : > { %v1538_v8 = vpop.xlane.xlu0 %1537 }
 0x3d1   : > { %2873 = vrsqrt.f32 %v1625_v57  ;;  %v1595_v35 = vmul.f32 0.015625, %v1538_v8  ;;  %v1626_v62 = vadd.f32 1e-05, %v1594_v51 }
 0x3d2   : > { %v1540_v42 = vpop.xlane.xlu1 %1539 }
 0x3d3   : > { %v2866_v13 = vpop.eup %2865  ;;  %v1627_v34 = vadd.f32 1e-05, %v1595_v35  ;;  %2875 = vrsqrt.f32 %v1626_v62  ;;  %v1596_v19 = vmul.f32 0.015625, %v1540_v42 }
 0x3d4   : > { %v1542_v29 = vpop.xlane.xlu0 %1541  ;;  %v1685_v63 = vmul.f32 %v2866_v13, %v4045_v21 }
 0x3d5   : > { %2877 = vrsqrt.f32 %v1627_v34  ;;  %v1597_v31 = vmul.f32 0.015625, %v1542_v29  ;;  %v2868_v46 = vpop.eup %2867  ;;  %v1628_v38 = vadd.f32 1e-05, %v1596_v19 }
 0x3d6   : > { %v1723_v7 = vmul.f32 %v4238_v12, %v1685_v63  ;;  %v1544_v54 = vpop.xlane.xlu1 %1543  ;;  %v1686_v18 = vmul.f32 %v2868_v46, %v4052_v16 }
 0x3d7   : > { %v2870_v28 = vpop.eup %2869  ;;  %v1629_v4 = vadd.f32 1e-05, %v1597_v31  ;;  %2879 = vrsqrt.f32 %v1628_v38  ;;  %v1598_v58 = vmul.f32 0.015625, %v1544_v54 }
 0x3d8   : > { %v1546_v6 = vpop.xlane.xlu0 %1545  ;;  %v1687_v37 = vmul.f32 %v2870_v28, %v4055_v22  ;;  %v1724_v39 = vmul.f32 %v4238_v12, %v1686_v18  ;;  %v1762_v14 = vadd.f32 %v4246_v17, %v1723_v7 }
 0x3d9   : > { %2881 = vrsqrt.f32 %v1629_v4  ;;  %v1599_v21 = vmul.f32 0.015625, %v1546_v6  ;;  %v2872_v55 = vpop.eup %2871  ;;  %v1630_v49 = vadd.f32 1e-05, %v1598_v58 }
 0x3da   : > { %v1548_v57 = vpop.xlane.xlu1 %1547  ;;  %v1763_v53 = vadd.f32 %v4246_v17, %v1724_v39  ;;  %v1688_v16 = vmul.f32 %v2872_v55, %v4064_v59  ;;  %v1725_v51 = vmul.f32 %v4238_v12, %v1687_v37 }
 0x3db   : > { %v2874_v50 = vpop.eup %2873  ;;  %v1631_v10 = vadd.f32 1e-05, %v1599_v21  ;;  %2883 = vrsqrt.f32 %v1630_v49  ;;  %v1600_v8 = vmul.f32 0.015625, %v1548_v57 }
 0x3dc   : > { %v1550_v22 = vpop.xlane.xlu0 %1549  ;;  %v1689_v35 = vmul.f32 %v2874_v50, %v4067_v61  ;;  %v1794_v13 = vpack.c.bf16 %v1763_v53, %v1762_v14  ;;  %v1726_v34 = vmul.f32 %v4238_v12, %v1688_v16  ;;  %v1764_v59 = vadd.f32 %v4246_v17, %v1725_v51 }
 0x3dd   : > { %2885 = vrsqrt.f32 %v1631_v10  ;;  %v1601_v62 = vmul.f32 0.015625, %v1550_v22  ;;  %v2876_v42 = vpop.eup %2875  ;;  %v1632_v27 = vadd.f32 1e-05, %v1600_v8 }
 0x3de   : > { %v1727_v19 = vmul.f32 %v4238_v12, %v1689_v35  ;;  %v1552_v31 = vpop.xlane.xlu1 %1551  ;;  %2615 = vmatprep.mubr.bf16.mxu1 %v1794_v13  ;;  %v1765_v46 = vadd.f32 %v4246_v17, %v1726_v34  ;;  %v1690_v38 = vmul.f32 %v2876_v42, %v4076_v20 }
 0x3df   : > { %v2878_v29 = vpop.eup %2877  ;;  %v1633_v63 = vadd.f32 1e-05, %v1601_v62  ;;  %2887 = vrsqrt.f32 %v1632_v27  ;;  %v1602_v61 = vmul.f32 0.015625, %v1552_v31 }
 0x3e0   : > { %v1554_v7 = vpop.xlane.xlu0 %1553  ;;  %v1691_v28 = vmul.f32 %v2878_v29, %v4079_v43  ;;  %v1795_v54 = vpack.c.bf16 %v1765_v46, %v1764_v59  ;;  %v1728_v18 = vmul.f32 %v4238_v12, %v1690_v38  ;;  %v1766_v37 = vadd.f32 %v4246_v17, %v1727_v19 }
 0x3e1   : > { %2889 = vrsqrt.f32 %v1633_v63  ;;  %v1603_v4 = vmul.f32 0.015625, %v1554_v7  ;;  %v2880_v58 = vpop.eup %2879  ;;  %v1634_v6 = vadd.f32 1e-05, %v1602_v61 }
 0x3e2   : > { %v1556_v55 = vpop.xlane.xlu1 %1555  ;;  %2616 = vmatmul.mubr.bf16.vlgmr.msra.gmra.mrb[0].mxu1 %v1795_v54  ;;  %v1767_v20 = vadd.f32 %v4246_v17, %v1728_v18  ;;  %v1692_v49 = vmul.f32 %v2880_v58, %v4088_v41  ;;  %v1729_v14 = vmul.f32 %v4238_v12, %v1691_v28 }
 0x3e3   : > { %v2882_v21 = vpop.eup %2881  ;;  %v1635_v39 = vadd.f32 1e-05, %v1603_v4  ;;  %2891 = vrsqrt.f32 %v1634_v6  ;;  %v1604_v43 = vmul.f32 0.015625, %v1556_v55 }
 0x3e4   : > { %v1558_v50 = vpop.xlane.xlu0 %1557  ;;  %v1693_v10 = vmul.f32 %v2882_v21, %v4091_v24  ;;  %v1796_v53 = vpack.c.bf16 %v1767_v20, %v1766_v37  ;;  %v1730_v16 = vmul.f32 %v4238_v12, %v1692_v49  ;;  %v1768_v41 = vadd.f32 %v4246_v17, %v1729_v14 }
 0x3e5   : > { %2893 = vrsqrt.f32 %v1635_v39  ;;  %v1605_v57 = vmul.f32 0.015625, %v1558_v50  ;;  %v2884_v51 = vpop.eup %2883  ;;  %v1636_v8 = vadd.f32 1e-05, %v1604_v43 }
 0x3e6   : > { %v1731_v22 = vmul.f32 %v4238_v12, %v1693_v10  ;;  %v1560_v13 = vpop.xlane.xlu1 %1559  ;;  %2619 = vmatprep.mubr.bf16.mxu1 %v1796_v53  ;;  %v1769_v34 = vadd.f32 %v4246_v17, %v1730_v16  ;;  %v1694_v42 = vmul.f32 %v2884_v51, %v4100_v25 }
 0x3e7   : > { %v2886_v35 = vpop.eup %2885  ;;  %v1637_v62 = vadd.f32 1e-05, %v1605_v57  ;;  %2895 = vrsqrt.f32 %v1636_v8  ;;  %v1606_v24 = vmul.f32 0.015625, %v1560_v13 }
 0x3e8   : > { %v1562_v27 = vpop.xlane.xlu0 %1561  ;;  %v1695_v19 = vmul.f32 %v2886_v35, %v4103_v15  ;;  %v1797_v63 = vpack.c.bf16 %v1769_v34, %v1768_v41  ;;  %v1732_v31 = vmul.f32 %v4238_v12, %v1694_v42  ;;  %v1770_v38 = vadd.f32 %v4246_v17, %v1731_v22 }
 0x3e9   : > { %2897 = vrsqrt.f32 %v1637_v62  ;;  %v1607_v29 = vmul.f32 0.015625, %v1562_v27  ;;  %v2888_v59 = vpop.eup %2887  ;;  %v1638_v46 = vadd.f32 1e-05, %v1606_v24 }
 0x3ea   : > { %v1564_v28 = vpop.xlane.xlu1 %1563  ;;  %2620 = vmatmul.mubr.bf16.gmra.mrb[4].mxu1 %v1797_v63  ;;  %v1771_v25 = vadd.f32 %v4246_v17, %v1732_v31  ;;  %v1696_v4 = vmul.f32 %v2888_v59, %v4112_v0  ;;  %v1733_v54 = vmul.f32 %v4238_v12, %v1695_v19 }
 0x3eb   : > { %v2890_v61 = vpop.eup %2889  ;;  %v1639_v7 = vadd.f32 1e-05, %v1607_v29  ;;  %2899 = vrsqrt.f32 %v1638_v46  ;;  %v1608_v15 = vmul.f32 0.015625, %v1564_v28 }
 0x3ec   : > { %v1566_v18 = vpop.xlane.xlu0 %1565  ;;  %v1697_v58 = vmul.f32 %v2890_v61, %v4115_v26  ;;  %v1798_v37 = vpack.c.bf16 %v1771_v25, %v1770_v38  ;;  %v1734_v21 = vmul.f32 %v4238_v12, %v1696_v4  ;;  %v1772_v0 = vadd.f32 %v4246_v17, %v1733_v54 }
 0x3ed   : > { %2901 = vrsqrt.f32 %v1639_v7  ;;  %v1609_v6 = vmul.f32 0.015625, %v1566_v18  ;;  %v2892_v39 = vpop.eup %2891  ;;  %v1640_v55 = vadd.f32 1e-05, %v1608_v15 }
 0x3ee   : > { %v1735_v20 = vmul.f32 %v4238_v12, %v1697_v58  ;;  %v1568_v43 = vpop.xlane.xlu1 %1567  ;;  %2623 = vmatprep.mubr.bf16.mxu1 %v1798_v37  ;;  %v1773_v50 = vadd.f32 %v4246_v17, %v1734_v21  ;;  %v1698_v10 = vmul.f32 %v2892_v39, %v4124_v32 }
 0x3ef   : > { %v2894_v49 = vpop.eup %2893  ;;  %v1641_v14 = vadd.f32 1e-05, %v1609_v6  ;;  %2903 = vrsqrt.f32 %v1640_v55  ;;  %v1610_v26 = vmul.f32 0.015625, %v1568_v43 }
 0x3f0   : > { %v1570_v57 = vpop.xlane.xlu0 %1569  ;;  %v1699_v53 = vmul.f32 %v2894_v49, %v4127_v44  ;;  %v1799_v51 = vpack.c.bf16 %v1773_v50, %v1772_v0  ;;  %v1736_v8 = vmul.f32 %v4238_v12, %v1698_v10  ;;  %v1774_v62 = vadd.f32 %v4246_v17, %v1735_v20 }
 0x3f1   : > { %2905 = vrsqrt.f32 %v1641_v14  ;;  %v1611_v16 = vmul.f32 0.015625, %v1570_v57  ;;  %v2896_v22 = vpop.eup %2895  ;;  %v1642_v35 = vadd.f32 1e-05, %v1610_v26 }
 0x3f2   : > { %v1572_v34 = vpop.xlane.xlu1 %1571  ;;  %2624 = vmatmul.mubr.bf16.gmra.mrb[8].mxu1 %v1799_v51  ;;  %v1775_v32 = vadd.f32 %v4246_v17, %v1736_v8  ;;  %v1700_v42 = vmul.f32 %v2896_v22, %v4136_v33  ;;  %v1737_v24 = vmul.f32 %v4238_v12, %v1699_v53 }
 0x3f3   : > { %v2898_v13 = vpop.eup %2897  ;;  %v1643_v41 = vadd.f32 1e-05, %v1611_v16  ;;  %2907 = vrsqrt.f32 %v1642_v35  ;;  %v1612_v44 = vmul.f32 0.015625, %v1572_v34 }
 0x3f4   : > { %v1574_v27 = vpop.xlane.xlu0 %1573  ;;  %v1701_v19 = vmul.f32 %v2898_v13, %v4139_v3  ;;  %v1800_v63 = vpack.c.bf16 %v1775_v32, %v1774_v62  ;;  %v1738_v31 = vmul.f32 %v4238_v12, %v1700_v42  ;;  %v1776_v33 = vadd.f32 %v4246_v17, %v1737_v24 }
 0x3f5   : > { %2909 = vrsqrt.f32 %v1643_v41  ;;  %v1613_v29 = vmul.f32 0.015625, %v1574_v27  ;;  %v2900_v59 = vpop.eup %2899  ;;  %v1644_v46 = vadd.f32 1e-05, %v1612_v44 }
 0x3f6   : > { %v1739_v38 = vmul.f32 %v4238_v12, %v1701_v19  ;;  %v1576_v28 = vpop.xlane.xlu1 %1575  ;;  %2627 = vmatprep.mubr.bf16.mxu1 %v1800_v63  ;;  %v1777_v25 = vadd.f32 %v4246_v17, %v1738_v31  ;;  %v1702_v4 = vmul.f32 %v2900_v59, %v4148_v60 }
 0x3f7   : > { %v2902_v61 = vpop.eup %2901  ;;  %v1645_v7 = vadd.f32 1e-05, %v1613_v29  ;;  %2911 = vrsqrt.f32 %v1644_v46  ;;  %v1614_v3 = vmul.f32 0.015625, %v1576_v28 }
 0x3f8   : > { %v1578_v54 = vpop.xlane.xlu0 %1577  ;;  %v1703_v15 = vmul.f32 %v2902_v61, %v4151_v36  ;;  %v1801_v58 = vpack.c.bf16 %v1777_v25, %v1776_v33  ;;  %v1740_v6 = vmul.f32 %v4238_v12, %v1702_v4  ;;  %v1778_v39 = vadd.f32 %v4246_v17, %v1739_v38 }
 0x3f9   : > { %2913 = vrsqrt.f32 %v1645_v7  ;;  %v1615_v18 = vmul.f32 0.015625, %v1578_v54  ;;  %v2904_v37 = vpop.eup %2903  ;;  %v1646_v21 = vadd.f32 1e-05, %v1614_v3 }
 0x3fa   : > { %v1580_v49 = vpop.xlane.xlu1 %1579  ;;  %2628 = vmatmul.mubr.bf16.gmra.mrb[12].mxu1 %v1801_v58  ;;  %v1779_v60 = vadd.f32 %v4246_v17, %v1740_v6  ;;  %v1704_v14 = vmul.f32 %v2904_v37, %v4160_v52  ;;  %v1741_v43 = vmul.f32 %v4238_v12, %v1703_v15 }
 0x3fb   : > { %v2906_v55 = vpop.eup %2905  ;;  %v1647_v20 = vadd.f32 1e-05, %v1615_v18  ;;  %2915 = vrsqrt.f32 %v1646_v21  ;;  %v1616_v36 = vmul.f32 0.015625, %v1580_v49 }
 0x3fc   : > { %v1582_v0 = vpop.xlane.xlu0 %1581  ;;  %v1705_v50 = vmul.f32 %v2906_v55, %v4163_v2  ;;  %v1802_v26 = vpack.c.bf16 %v1779_v60, %v1778_v39  ;;  %v1742_v57 = vmul.f32 %v4238_v12, %v1704_v14  ;;  %v1780_v52 = vadd.f32 %v4246_v17, %v1741_v43 }
 0x3fd   : > { %2917 = vrsqrt.f32 %v1647_v20  ;;  %v1617_v10 = vmul.f32 0.015625, %v1582_v0  ;;  %v2908_v53 = vpop.eup %2907  ;;  %v1648_v16 = vadd.f32 1e-05, %v1616_v36 }
 0x3fe   : > { %v1743_v51 = vmul.f32 %v4238_v12, %v1705_v50  ;;  %v1584_v35 = vpop.xlane.xlu1 %1583  ;;  %2631 = vmatprep.mubr.bf16.mxu1 %v1802_v26  ;;  %v1781_v62 = vadd.f32 %v4246_v17, %v1742_v57  ;;  %v1706_v13 = vmul.f32 %v2908_v53, %v4172_v5 }
 0x3ff   : > { %v2910_v8 = vpop.eup %2909  ;;  %v1649_v22 = vadd.f32 1e-05, %v1617_v10  ;;  %2919 = vrsqrt.f32 %v1648_v16  ;;  %v1618_v2 = vmul.f32 0.015625, %v1584_v35 }
 0x400   : > { %v1586_v41 = vpop.xlane.xlu0 %1585  ;;  %v1707_v34 = vmul.f32 %v2910_v8, %v4175_v48  ;;  %v1803_v42 = vpack.c.bf16 %v1781_v62, %v1780_v52  ;;  %v1744_v24 = vmul.f32 %v4238_v12, %v1706_v13  ;;  %v1782_v19 = vadd.f32 %v4246_v17, %v1743_v51 }
 0x401   : > { %2921 = vrsqrt.f32 %v1649_v22  ;;  %v1619_v32 = vmul.f32 0.015625, %v1586_v41  ;;  %v2912_v44 = vpop.eup %2911  ;;  %v1650_v27 = vadd.f32 1e-05, %v1618_v2 }
 0x402   : > { %v1588_v31 = vpop.xlane.xlu1 %1587  ;;  %2632 = vmatmul.mubr.bf16.gmra.mrb[16].mxu1 %v1803_v42  ;;  %v1783_v5 = vadd.f32 %v4246_v17, %v1744_v24  ;;  %v1708_v59 = vmul.f32 %v2912_v44, %v4184_v9  ;;  %v1745_v46 = vmul.f32 %v4238_v12, %v1707_v34 }
 0x403   : > { %v2914_v29 = vpop.eup %2913  ;;  %v1651_v63 = vadd.f32 1e-05, %v1619_v32  ;;  %2923 = vrsqrt.f32 %v1650_v27  ;;  %v1620_v48 = vmul.f32 0.015625, %v1588_v31 }
 0x404   : > { %v1709_v38 = vmul.f32 %v2914_v29, %v4187_v11  ;;  %v1804_v61 = vpack.c.bf16 %v1783_v5, %v1782_v19  ;;  %v1746_v7 = vmul.f32 %v4238_v12, %v1708_v59  ;;  %v1784_v4 = vadd.f32 %v4246_v17, %v1745_v46 }
 0x405   : > { %2925 = vrsqrt.f32 %v1651_v63  ;;  %v2916_v28 = vpop.eup %2915  ;;  %v1652_v33 = vadd.f32 1e-05, %v1620_v48 }
 0x406   : > { %2635 = vmatprep.mubr.bf16.mxu1 %v1804_v61  ;;  %v1785_v3 = vadd.f32 %v4246_v17, %v1746_v7  ;;  %v1710_v9 = vmul.f32 %v2916_v28, %v4196_v23  ;;  %v1747_v54 = vmul.f32 %v4238_v12, %v1709_v38 }
 0x407   : > { %v2918_v25 = vpop.eup %2917  ;;  %2927 = vrsqrt.f32 %v1652_v33 }
 0x408   : > { %v1711_v15 = vmul.f32 %v2918_v25, %v4199_v1  ;;  %v1805_v11 = vpack.c.bf16 %v1785_v3, %v1784_v4  ;;  %v1748_v18 = vmul.f32 %v4238_v12, %v1710_v9  ;;  %v1786_v37 = vadd.f32 %v4246_v17, %v1747_v54 }
 0x409   : > { %v2920_v58 = vpop.eup %2919 }
 0x40a   : > { %2636 = vmatmul.mubr.bf16.gmra.mrb[20].mxu1 %v1805_v11  ;;  %v1787_v21 = vadd.f32 %v4246_v17, %v1748_v18  ;;  %v1712_v39 = vmul.f32 %v2920_v58, %v4208_v47  ;;  %v1749_v55 = vmul.f32 %v4238_v12, %v1711_v15 }
 0x40b   : > { %v2922_v6 = vpop.eup %2921 }
 0x40c   : > { %v1713_v23 = vmul.f32 %v2922_v6, %v4211_v56  ;;  %v1806_v20 = vpack.c.bf16 %v1787_v21, %v1786_v37  ;;  %v1750_v49 = vmul.f32 %v4238_v12, %v1712_v39  ;;  %v1788_v14 = vadd.f32 %v4246_v17, %v1749_v55 }
 0x40d   : > { %v2924_v1 = vpop.eup %2923 }
 0x40e   : > { %2639 = vmatprep.mubr.bf16.mxu1 %v1806_v20  ;;  %v1789_v43 = vadd.f32 %v4246_v17, %v1750_v49  ;;  %v1714_v36 = vmul.f32 %v2924_v1, %v4220_v30  ;;  %v1751_v0 = vmul.f32 %v4238_v12, %v1713_v23 }
 0x40f   : > { %v2926_v60 = vpop.eup %2925 }
 0x410   : > { %v1715_v47 = vmul.f32 %v2926_v60, %v4223_v40  ;;  %v1807_v50 = vpack.c.bf16 %v1789_v43, %v1788_v14  ;;  %v1752_v56 = vmul.f32 %v4238_v12, %v1714_v36  ;;  %v1790_v26 = vadd.f32 %v4246_v17, %v1751_v0 }
 0x411   : > { %v2928_v10 = vpop.eup %2927 }
 0x412   : > { %2640 = vmatmul.mubr.bf16.gmra.mrb[24].mxu1 %v1807_v50  ;;  %v1791_v57 = vadd.f32 %v4246_v17, %v1752_v56  ;;  %v1716_v53 = vmul.f32 %v2928_v10, %v4231_v45  ;;  %v1753_v16 = vmul.f32 %v4238_v12, %v1715_v47 }
 0x414   : > { %v1808_v51 = vpack.c.bf16 %v1791_v57, %v1790_v26  ;;  %v1754_v30 = vmul.f32 %v4238_v12, %v1716_v53  ;;  %v1792_v40 = vadd.f32 %v4246_v17, %v1753_v16 }
 0x416   : > { %2643 = vmatprep.mubr.bf16.mxu1 %v1808_v51  ;;  %v1793_v8 = vadd.f32 %v4246_v17, %v1754_v30 }
 0x418   : > { %v1809_v22 = vpack.c.bf16 %v1793_v8, %v1792_v40 }
 0x41a   : > { %2644 = vmatmul.mubr.bf16.gmra.mrb[28].mxu1 %v1809_v22 }
 0x4b5   : > { %v2617_v35 = vpop.f32.mrb[0].mxu1 }
 0x4b6   : > { %v1908_v52 = vpop.f32.mrb[1].mxu1 }
 0x4b7   : > { %v2618_v62 = vpop.f32.mrb[2].mxu1 }
 0x4b8   : > { %v2416_v13 = vpack.c.bf16 %v2618_v62, %v2617_v35  ;;  %v1911_v2 = vpop.f32.mrb[3].mxu1 }
 0x4b9   : > { %v2411_v41 = vpack.c.bf16 %v1911_v2, %v1908_v52 }
 0x4ba   : > { %2488 = vst [vmem:[%s4343_s18 + $0x8] sm:$0xff] %v2416_v13  }
 0x4bb   : > { %2412 = vst [vmem:[%s4343_s18] sm:$0xff] %v2411_v41  }
 0x4bd   : > { %v2621_v45 = vpop.f32.mrb[4].mxu1 }
 0x4be   : > { %v1924_v12 = vpop.f32.mrb[5].mxu1 }
 0x4bf   : > { %v2622_v17 = vpop.f32.mrb[6].mxu1 }
 0x4c0   : > { %v2426_v34 = vpack.c.bf16 %v2622_v17, %v2621_v45  ;;  %v1927_v32 = vpop.f32.mrb[7].mxu1 }
 0x4c1   : > { %v2421_v42 = vpack.c.bf16 %v1927_v32, %v1924_v12 }
 0x4c2   : > { %2490 = vst [vmem:[%s4343_s18 + $0x18] sm:$0xff] %v2426_v34  }
 0x4c3   : > { %2489 = vst [vmem:[%s4343_s18 + $0x10] sm:$0xff] %v2421_v42  }
 0x4c5   : > { %v2625_v24 = vpop.f32.mrb[8].mxu1 }
 0x4c6   : > { %v1940_v44 = vpop.f32.mrb[9].mxu1 }
 0x4c7   : > { %v2626_v27 = vpop.f32.mrb[10].mxu1 }
 0x4c8   : > { %v2436_v19 = vpack.c.bf16 %v2626_v27, %v2625_v24  ;;  %v1943_v29 = vpop.f32.mrb[11].mxu1 }
 0x4c9   : > { %v2431_v63 = vpack.c.bf16 %v1943_v29, %v1940_v44 }
 0x4ca   : > { %2492 = vst [vmem:[%s4343_s18 + $0x28] sm:$0xff] %v2436_v19  }
 0x4cb   : > { %2491 = vst [vmem:[%s4343_s18 + $0x20] sm:$0xff] %v2431_v63  }
 0x4cd   : > { %v2629_v31 = vpop.f32.mrb[12].mxu1 }
 0x4ce   : > { %v1956_v5 = vpop.f32.mrb[13].mxu1 }
 0x4cf   : > { %v2630_v59 = vpop.f32.mrb[14].mxu1 }
 0x4d0   : > { %v2446_v46 = vpack.c.bf16 %v2630_v59, %v2629_v31  ;;  %v1959_v48 = vpop.f32.mrb[15].mxu1 }
 0x4d1   : > { %v2441_v38 = vpack.c.bf16 %v1959_v48, %v1956_v5 }
 0x4d2   : > { %2494 = vst [vmem:[%s4343_s18 + $0x38] sm:$0xff] %v2446_v46  }
 0x4d3   : > { %2493 = vst [vmem:[%s4343_s18 + $0x30] sm:$0xff] %v2441_v38  }
 0x4d5   : > { %v2633_v61 = vpop.f32.mrb[16].mxu1 }
 0x4d6   : > { %v1972_v7 = vpop.f32.mrb[17].mxu1 }
 0x4d7   : > { %v2634_v28 = vpop.f32.mrb[18].mxu1 }
 0x4d8   : > { %v2456_v33 = vpack.c.bf16 %v2634_v28, %v2633_v61  ;;  %v1975_v25 = vpop.f32.mrb[19].mxu1 }
 0x4d9   : > { %v2451_v4 = vpack.c.bf16 %v1975_v25, %v1972_v7 }
 0x4da   : > { %2496 = vst [vmem:[%s4343_s18 + $0x48] sm:$0xff] %v2456_v33  }
 0x4db   : > { %2495 = vst [vmem:[%s4343_s18 + $0x40] sm:$0xff] %v2451_v4  }
 0x4dd   : > { %v2637_v3 = vpop.f32.mrb[20].mxu1 }
 0x4de   : > { %v1988_v9 = vpop.f32.mrb[21].mxu1 }
 0x4df   : > { %v2638_v54 = vpop.f32.mrb[22].mxu1 }
 0x4e0   : > { %v2466_v15 = vpack.c.bf16 %v2638_v54, %v2637_v3  ;;  %v1991_v11 = vpop.f32.mrb[23].mxu1 }
 0x4e1   : > { %v2461_v18 = vpack.c.bf16 %v1991_v11, %v1988_v9 }
 0x4e2   : > { %2498 = vst [vmem:[%s4343_s18 + $0x58] sm:$0xff] %v2466_v15  }
 0x4e3   : > { %2497 = vst [vmem:[%s4343_s18 + $0x50] sm:$0xff] %v2461_v18  }
 0x4e5   : > { %v2641_v58 = vpop.f32.mrb[24].mxu1 }
 0x4e6   : > { %v2004_v6 = vpop.f32.mrb[25].mxu1 }
 0x4e7   : > { %v2642_v37 = vpop.f32.mrb[26].mxu1 }
 0x4e8   : > { %v2476_v21 = vpack.c.bf16 %v2642_v37, %v2641_v58  ;;  %v2007_v39 = vpop.f32.mrb[27].mxu1 }
 0x4e9   : > { %v2471_v55 = vpack.c.bf16 %v2007_v39, %v2004_v6 }
 0x4ea   : > { %2500 = vst [vmem:[%s4343_s18 + $0x68] sm:$0xff] %v2476_v21  }
 0x4eb   : > { %2499 = vst [vmem:[%s4343_s18 + $0x60] sm:$0xff] %v2471_v55  }
 0x4ed   : > { %v2645_v23 = vpop.f32.mrb[28].mxu1 }
 0x4ee   : > { %v2020_v20 = vpop.f32.mrb[29].mxu1 }
 0x4ef   : > { %v2646_v49 = vpop.f32.mrb[30].mxu1 }
 0x4f0   : > { %v2486_v1 = vpack.c.bf16 %v2646_v49, %v2645_v23  ;;  %v2023_v60 = vpop.f32.mrb[31].mxu1 }
 0x4f1   : > { %v2481_v14 = vpack.c.bf16 %v2023_v60, %v2020_v20 }
 0x4f2   : > { %2502 = vst [vmem:[%s4343_s18 + $0x78] sm:$0xff] %v2486_v1  }
 0x4f3   : > { %2501 = vst [vmem:[%s4343_s18 + $0x70] sm:$0xff] %v2481_v14  }
 0x4f4   : > { %3028 = shalt.err (!%p3025_p7)
}
 0x4f5   : > { %s3029_s24 = scalar_lea.hbm %s4364_s19, 2048  ;;  %s3033_s11 = scalar_lea.hbm %s4419_s8, 8192 }
 0x4f6   : > { %p3030_p9 = scmp.ne.s32.totalorder %s4364_s19, %s3029_s24  ;;  %p3034_p5 = scmp.lt.u32.totalorder %s4364_s19, %s4419_s8 }
 0x4f7   : > { %p3035_p10 = scmp.lt.u32.totalorder %s3033_s11, %s3029_s24  ;;  %p3037_p1 = scmp.lt.u32.totalorder %s3029_s24, %s4364_s19 }
 0x4f8   : > { %p3031_p12 = pnand %p3030_p9, %p3255_p4 }
 0x4f9   : > { %p3036_p11 = por %p3035_p10, %p3034_p5 }
 0x4fa   : > { %p3032_p0 = pneg %p3031_p12 }
 0x4fb   : > { %p3038_p2 = por %p3037_p1, %p3036_p11 }
 0x4fd   : > { %p3039_p6 = pnand %p3038_p2, %p3032_p0 }
 0x4ff   : > { %3042 = shalt.err (!%p3039_p6)
}
 0x500   : > { %s3096_s9 = smov 64   ;;  %s3097_s14 = smov 4  }
 0x501   : > { %2657 = dma.vmem_to_hbm [thread:$0]  (%p3255_p4), %s4366_s13, 2048, %s4364_s19, %s2196_s16, %s3096_s9, %s3096_s9, %s3097_s14  }
 0x502 PF: > { %p2679_p8 = scmp.ge.s32.totalorder %s3085_s30, 2  ;;  %s2224_s21 = sand.u32 1, %s3073_s27  }
 0x503   : > { %p4434_p13 = scmp.ne.s32.totalorder %s4424_s12, 0  ;;  %s2225_s10 = scalar_lea.sflag [#allocation4], %s2224_s21 }
 0x505   : > { %p2671_p3 = pnand %p2679_p8, %p4434_p13 }
 0x507   : > { %3068 = dma.done.wait (!%p2671_p3), %s2225_s10, 2048  }
 0x508   : > { %3070 = vsyncadd (!%p2671_p3), %s2225_s10, 4294965248  ;;  %p22_p7 = scmp.ge.s32.totalorder %s3245_s20, 6   ;;  %s4435_s27 = smov %s3077_s28 }
 0x509   : > { %s4436_s28 = smov %s3081_s29  ;;  %s4437_s29 = smov %s3261_s23 }
 0x50a   : > { %s4438_s30 = smov %s3245_s20  ;;  %24 = sbr.rel (!%p22_p7) target bundleno = 6 (0x6), region = 105 }
 0x511   :  { %2230 = vsyncpa [#allocation3], 1 }
 0x512   :  { %2232 = vsyncpa [#allocation3 + $0x1], 1 }
 0x513   :  { %2233 = vsyncpa [#allocation6], 1 }
 0x514   :  { %2234 = vsyncpa [#allocation4], 1 }
 0x515   :  { %2236 = vsyncpa [#allocation4 + $0x1], 1 }

</bundles_post_ra>
